<compile_context>
chip_gen: v6e
topology: v6e:2x2x1
jax: 0.10.0
libtpu: 0.0.40
codegen_flags: <defaults>
</compile_context>

<pallas_src>
import functools

import jax
import jax.numpy as jnp
from jax import lax
from jax.experimental import pallas as pl
from jax.experimental.pallas import tpu as pltpu

EPS = 1e-5  # PyTorch LayerNorm default


def _attention_kernel(x_ref, gamma_ref, beta_ref, w3_ref, wout_ref, bout_ref,
                      bias_ref, o_ref, *, num_heads, dim_head, seq_len):
    H, d, N = num_heads, dim_head, seq_len
    D = H * d

    # ---- LayerNorm over the feature axis (f32, VPU) ----------------------
    x = x_ref[0].astype(jnp.float32)                         # (N, D)
    mean = jnp.mean(x, axis=-1, keepdims=True)
    var = jnp.mean((x - mean) ** 2, axis=-1, keepdims=True)
    xn = (x - mean) * lax.rsqrt(var + EPS)
    xn = xn * gamma_ref[...] + beta_ref[...]                  # (N, D)

    # ---- Fused QKV projection: one batched dot over 3H head-blocks --------
    # Broadcast xn along a leading (3H) axis so the whole QKV projection is a
    # single leading-batch dot_general (no per-head loop, no unaligned lane
    # slicing).  The softmax scale is already folded into the Wq blocks.
    xh = jnp.broadcast_to(xn.astype(jnp.bfloat16)[None], (3 * H, N, D))
    qkv = jnp.einsum('hnd,hde->hne', xh, w3_ref[...],
                     preferred_element_type=jnp.float32)      # (3H, N, d) f32
    qkv = qkv.astype(jnp.bfloat16)
    q = qkv[:H]                                               # (H, N, d) bf16
    k = qkv[H:2 * H]
    v = qkv[2 * H:]

    # ---- Attention, batched over heads ------------------------------------
    scores = jnp.einsum('hnd,hmd->hnm', q, k,
                        preferred_element_type=jnp.float32)   # (H, N, N) f32
    scores = scores + bias_ref[...]                           # relative position bias

    m = jnp.max(scores, axis=-1, keepdims=True)
    p = jnp.exp(scores - m)
    denom = jnp.sum(p, axis=-1, keepdims=True)
    attn = p * pl.reciprocal(denom, approx=True)              # EUP vrcp slot
    # dropout(p=0.0) is the identity -> skipped

    out = jnp.einsum('hnm,hmd->hnd', attn.astype(jnp.bfloat16), v,
                     preferred_element_type=jnp.float32)      # (H, N, d) f32

    # ---- Output projection -------------------------------------------------
    # concat_h(out_h) @ W_out == sum_h out_h @ W_out[h*d:(h+1)*d, :]
    y_part = jnp.einsum('hnd,hdD->hnD', out.astype(jnp.bfloat16), wout_ref[...],
                        preferred_element_type=jnp.float32)   # (H, N, D)
    y = jnp.sum(y_part, axis=0) + bout_ref[...]               # (N, D) f32

    # ---- Lane-dense store: (N, D) -> (1, N*D), N*D multiple of 128 ---------
    y_row = jnp.concatenate([y[i:i + 1, :] for i in range(N)], axis=1)
    o_ref[0] = y_row.astype(o_ref.dtype)                      # (1, N*D)


def attention_pallas(x, gamma, beta, w_qkv, w_out, b_out, rel_bias, *, num_heads):
    B, N, D = x.shape
    H = num_heads
    assert D % H == 0, "dim must be evenly divisible by num_heads"
    d = D // H
    scale = d ** -0.5

    # One-time wrapper-side weight rearrangement (plain XLA, outside kernel).
    wq_full, wk_full, wv_full = jnp.split(w_qkv, 3, axis=-1)      # (D, D) each
    wq_full = wq_full * scale                                     # fold softmax scale

    def per_head(w):   # (D, H*d) -> (H, D, d)
        return jnp.transpose(w.reshape(D, H, d), (1, 0, 2))

    # Stacked QKV weight: (3H, D, d) bf16 MXU operand.
    w3 = jnp.concatenate(
        [per_head(wq_full), per_head(wk_full), per_head(wv_full)],
        axis=0).astype(jnp.bfloat16)
    wout = w_out.reshape(H, d, D).astype(jnp.bfloat16)            # (H, d, D)

    gamma2 = gamma.reshape(1, D)
    beta2 = beta.reshape(1, D)
    bout2 = b_out.reshape(1, D)
    rel_bias = rel_bias.astype(jnp.float32)

    kernel = functools.partial(_attention_kernel,
                               num_heads=H, dim_head=d, seq_len=N)

    out_flat = pl.pallas_call(
        kernel,
        out_shape=jax.ShapeDtypeStruct((B, 1, N * D), x.dtype),   # lane-dense slab
        grid_spec=pltpu.PrefetchScalarGridSpec(
            num_scalar_prefetch=0,
            grid=(B,),
            in_specs=[
                pl.BlockSpec((1, N, D), lambda b: (b, 0, 0)),     # x
                pl.BlockSpec((1, D), lambda b: (0, 0)),           # gamma
                pl.BlockSpec((1, D), lambda b: (0, 0)),           # beta
                # Constant-index weight blocks (bf16, resident).  At production
                # D on v7x, add pipeline_mode=pl.Buffered(1) + vmem_limit_bytes.
                pl.BlockSpec((3 * H, D, d), lambda b: (0, 0, 0)), # stacked Wqkv
                pl.BlockSpec((H, d, D), lambda b: (0, 0, 0)),     # Wout per head
                pl.BlockSpec((1, D), lambda b: (0, 0)),           # b_out
                pl.BlockSpec((H, N, N), lambda b: (0, 0, 0)),     # rel bias
            ],
            out_specs=pl.BlockSpec((1, 1, N * D), lambda b: (b, 0, 0)),
        ),
        compiler_params=pltpu.CompilerParams(
            dimension_semantics=("parallel",)),                   # v7x: shard batches over 2 TCs
    )(x, gamma2, beta2, w3, wout, bout2, rel_bias)

    return out_flat.reshape(B, N, D)


def attention_reference(x, gamma, beta, w_qkv, w_out, b_out, rel_bias, *, num_heads):
    """Pure-JAX f32 reference mirroring the PyTorch forward."""
    B, N, D = x.shape
    d = D // num_heads
    scale = d ** -0.5

    mean = jnp.mean(x, axis=-1, keepdims=True)
    var = jnp.mean((x - mean) ** 2, axis=-1, keepdims=True)
    xn = (x - mean) / jnp.sqrt(var + EPS) * gamma + beta

    qkv = xn @ w_qkv
    q, k, v = jnp.split(qkv, 3, axis=-1)

    def to_heads(t):  # 'b n (h d) -> b h n d'
        return t.reshape(B, N, num_heads, d).transpose(0, 2, 1, 3)

    q, k, v = map(to_heads, (q, k, v))
    scores = jnp.einsum('bhid,bhjd->bhij', q, k) * scale + rel_bias[None]
    attn = jax.nn.softmax(scores, axis=-1)
    out = jnp.einsum('bhij,bhjd->bhid', attn, v)
    out = out.transpose(0, 2, 1, 3).reshape(B, N, D)
    return out @ w_out + b_out


if __name__ == "__main__":
    B, N, D, H = 2, 8, 64, 8

    key = jax.random.PRNGKey(0)
    k_x, k_g, k_b, k_qkv, k_wo, k_bo, k_rb = jax.random.split(key, 7)

    x = jax.random.normal(k_x, (B, N, D), dtype=jnp.float32)
    gamma = 1.0 + 0.1 * jax.random.normal(k_g, (D,), dtype=jnp.float32)
    beta = 0.1 * jax.random.normal(k_b, (D,), dtype=jnp.float32)
    w_qkv = jax.random.normal(k_qkv, (D, 3 * D), dtype=jnp.float32) / jnp.sqrt(D)
    w_out = jax.random.normal(k_wo, (D, D), dtype=jnp.float32) / jnp.sqrt(D)
    b_out = 0.1 * jax.random.normal(k_bo, (D,), dtype=jnp.float32)
    rel_bias = 0.5 * jax.random.normal(k_rb, (H, N, N), dtype=jnp.float32)

    out = attention_pallas(x, gamma, beta, w_qkv, w_out, b_out, rel_bias,
                           num_heads=H)
    out = jax.block_until_ready(out)

    ref = attention_reference(x, gamma, beta, w_qkv, w_out, b_out, rel_bias,
                              num_heads=H)
    assert out.shape == (B, N, D)
    # bf16 MXU operands + approx reciprocal -> validate with a loosened tolerance.
    assert jnp.allclose(out, ref, atol=5e-2, rtol=5e-2), "mismatch vs reference"

    print("KERNEL_OK")
</pallas_src>

<mosaic_0001>
module attributes {stable_mosaic.version = 11 : i64} {
  func.func @_attention_kernel(%arg0: i32, %arg1: memref<1x8x64xf32, #tpu.memory_space<vmem>>, %arg2: memref<1x64xf32, #tpu.memory_space<vmem>>, %arg3: memref<1x64xf32, #tpu.memory_space<vmem>>, %arg4: memref<24x64x8xbf16, #tpu.memory_space<vmem>>, %arg5: memref<8x8x64xbf16, #tpu.memory_space<vmem>>, %arg6: memref<1x64xf32, #tpu.memory_space<vmem>>, %arg7: memref<8x8x8xf32, #tpu.memory_space<vmem>>, %arg8: memref<1x1x512xf32, #tpu.memory_space<vmem>>) attributes {dimension_semantics = [#tpu.dimension_semantics<parallel>], iteration_bounds = array<i64: 2>, scalar_prefetch = 0 : i64, scratch_operands = 0 : i64, tpu.core_type = #tpu.core_type<tc>, window_params = [{transform_indices = @transform_0, window_bounds = array<i64: 1, 8, 64>}, {pipeline_mode = #tpu.pipeline_mode<synchronous>, transform_indices = @transform_1, window_bounds = array<i64: 1, 64>}, {pipeline_mode = #tpu.pipeline_mode<synchronous>, transform_indices = @transform_2, window_bounds = array<i64: 1, 64>}, {pipeline_mode = #tpu.pipeline_mode<synchronous>, transform_indices = @transform_3, window_bounds = array<i64: 24, 64, 8>}, {pipeline_mode = #tpu.pipeline_mode<synchronous>, transform_indices = @transform_4, window_bounds = array<i64: 8, 8, 64>}, {pipeline_mode = #tpu.pipeline_mode<synchronous>, transform_indices = @transform_5, window_bounds = array<i64: 1, 64>}, {pipeline_mode = #tpu.pipeline_mode<synchronous>, transform_indices = @transform_6, window_bounds = array<i64: 8, 8, 8>}, {transform_indices = @transform_7, window_bounds = array<i64: 1, 1, 512>}]} {
    %c0 = arith.constant 0 : index
    %c0_0 = arith.constant 0 : index
    %c0_1 = arith.constant 0 : index
    %0 = vector.load %arg1[%c0, %c0_0, %c0_1] : memref<1x8x64xf32, #tpu.memory_space<vmem>>, vector<1x8x64xf32>
    %1 = vector.shape_cast %0 : vector<1x8x64xf32> to vector<8x64xf32>
    %cst = arith.constant dense<0.000000e+00> : vector<8xf32>
    %2 = vector.multi_reduction <add>, %1, %cst [1] : vector<8x64xf32> to vector<8xf32>
    %3 = vector.shape_cast %2 : vector<8xf32> to vector<8x1xf32>
    %cst_2 = arith.constant 6.400000e+01 : f32
    %4 = vector.broadcast %cst_2 : f32 to vector<8x1xf32>
    %5 = arith.divf %3, %4 : vector<8x1xf32>
    %6 = vector.broadcast %5 : vector<8x1xf32> to vector<8x64xf32>
    %7 = arith.subf %1, %6 : vector<8x64xf32>
    %8 = arith.mulf %7, %7 : vector<8x64xf32>
    %cst_3 = arith.constant dense<0.000000e+00> : vector<8xf32>
    %9 = vector.multi_reduction <add>, %8, %cst_3 [1] : vector<8x64xf32> to vector<8xf32>
    %10 = vector.shape_cast %9 : vector<8xf32> to vector<8x1xf32>
    %cst_4 = arith.constant 6.400000e+01 : f32
    %11 = vector.broadcast %cst_4 : f32 to vector<8x1xf32>
    %12 = arith.divf %10, %11 : vector<8x1xf32>
    %13 = vector.broadcast %5 : vector<8x1xf32> to vector<8x64xf32>
    %14 = arith.subf %1, %13 : vector<8x64xf32>
    %cst_5 = arith.constant 9.99999974E-6 : f32
    %15 = vector.broadcast %cst_5 : f32 to vector<8x1xf32>
    %16 = arith.addf %12, %15 : vector<8x1xf32>
    %17 = math.rsqrt %16 : vector<8x1xf32>
    %18 = vector.broadcast %17 : vector<8x1xf32> to vector<8x64xf32>
    %19 = arith.mulf %14, %18 : vector<8x64xf32>
    %c0_6 = arith.constant 0 : index
    %c0_7 = arith.constant 0 : index
    %20 = vector.load %arg2[%c0_6, %c0_7] : memref<1x64xf32, #tpu.memory_space<vmem>>, vector<1x64xf32>
    %21 = vector.broadcast %20 : vector<1x64xf32> to vector<8x64xf32>
    %22 = arith.mulf %19, %21 : vector<8x64xf32>
    %c0_8 = arith.constant 0 : index
    %c0_9 = arith.constant 0 : index
    %23 = vector.load %arg3[%c0_8, %c0_9] : memref<1x64xf32, #tpu.memory_space<vmem>>, vector<1x64xf32>
    %24 = vector.broadcast %23 : vector<1x64xf32> to vector<8x64xf32>
    %25 = arith.addf %22, %24 : vector<8x64xf32>
    %26 = arith.truncf %25 : vector<8x64xf32> to vector<8x64xbf16>
    %27 = vector.shape_cast %26 : vector<8x64xbf16> to vector<1x8x64xbf16>
    %28 = vector.shape_cast %27 : vector<1x8x64xbf16> to vector<1x8x64xbf16>
    %29 = vector.broadcast %28 : vector<1x8x64xbf16> to vector<24x8x64xbf16>
    %c0_10 = arith.constant 0 : index
    %c0_11 = arith.constant 0 : index
    %c0_12 = arith.constant 0 : index
    %30 = vector.load %arg4[%c0_10, %c0_11, %c0_12] : memref<24x64x8xbf16, #tpu.memory_space<vmem>>, vector<24x64x8xbf16>
    "tpu.trace_start"() <{level = 10 : i32, message = "hnd,hde->hne"}> : () -> ()
    %cst_13 = arith.constant dense<0.000000e+00> : vector<24x8x8xf32>
    %31 = tpu.matmul %29, %30, %cst_13 {dimension_numbers = #tpu.dot_dimension_numbers<[2], [1], [1], [2], [0, 0, 0, 1, 1, 2], [0], [0]>} : vector<24x8x64xbf16>, vector<24x64x8xbf16>, vector<24x8x8xf32> -> vector<24x8x8xf32>
    "tpu.trace_stop"() : () -> ()
    %32 = arith.truncf %31 : vector<24x8x8xf32> to vector<24x8x8xbf16>
    %33 = vector.extract_strided_slice %32 {offsets = [0, 0, 0], sizes = [8, 8, 8], strides = [1, 1, 1]} : vector<24x8x8xbf16> to vector<8x8x8xbf16>
    %34 = vector.extract_strided_slice %32 {offsets = [8, 0, 0], sizes = [8, 8, 8], strides = [1, 1, 1]} : vector<24x8x8xbf16> to vector<8x8x8xbf16>
    %35 = vector.extract_strided_slice %32 {offsets = [16, 0, 0], sizes = [8, 8, 8], strides = [1, 1, 1]} : vector<24x8x8xbf16> to vector<8x8x8xbf16>
    "tpu.trace_start"() <{level = 10 : i32, message = "hnd,hmd->hnm"}> : () -> ()
    %cst_14 = arith.constant dense<0.000000e+00> : vector<8x8x8xf32>
    %36 = tpu.matmul %33, %34, %cst_14 {dimension_numbers = #tpu.dot_dimension_numbers<[2], [2], [1], [1], [0, 0, 0, 1, 1, 1], [0], [0]>} : vector<8x8x8xbf16>, vector<8x8x8xbf16>, vector<8x8x8xf32> -> vector<8x8x8xf32>
    "tpu.trace_stop"() : () -> ()
    %c0_15 = arith.constant 0 : index
    %c0_16 = arith.constant 0 : index
    %c0_17 = arith.constant 0 : index
    %37 = vector.load %arg7[%c0_15, %c0_16, %c0_17] : memref<8x8x8xf32, #tpu.memory_space<vmem>>, vector<8x8x8xf32>
    %38 = arith.addf %36, %37 : vector<8x8x8xf32>
    %cst_18 = arith.constant dense<0xFF800000> : vector<8x8xf32>
    %39 = vector.multi_reduction <maximumf>, %38, %cst_18 [2] : vector<8x8x8xf32> to vector<8x8xf32>
    %40 = vector.shape_cast %39 : vector<8x8xf32> to vector<8x8x1xf32>
    %41 = vector.broadcast %40 : vector<8x8x1xf32> to vector<8x8x8xf32>
    %42 = arith.subf %38, %41 : vector<8x8x8xf32>
    %43 = math.exp %42 : vector<8x8x8xf32>
    %cst_19 = arith.constant dense<0.000000e+00> : vector<8x8xf32>
    %44 = vector.multi_reduction <add>, %43, %cst_19 [2] : vector<8x8x8xf32> to vector<8x8xf32>
    %45 = vector.shape_cast %44 : vector<8x8xf32> to vector<8x8x1xf32>
    %46 = tpu.reciprocal %45 {approx = true} : vector<8x8x1xf32> -> vector<8x8x1xf32>
    %47 = vector.broadcast %46 : vector<8x8x1xf32> to vector<8x8x8xf32>
    %48 = arith.mulf %43, %47 : vector<8x8x8xf32>
    %49 = arith.truncf %48 : vector<8x8x8xf32> to vector<8x8x8xbf16>
    "tpu.trace_start"() <{level = 10 : i32, message = "hnm,hmd->hnd"}> : () -> ()
    %cst_20 = arith.constant dense<0.000000e+00> : vector<8x8x8xf32>
    %50 = tpu.matmul %49, %35, %cst_20 {dimension_numbers = #tpu.dot_dimension_numbers<[2], [1], [1], [2], [0, 0, 0, 1, 1, 2], [0], [0]>} : vector<8x8x8xbf16>, vector<8x8x8xbf16>, vector<8x8x8xf32> -> vector<8x8x8xf32>
    "tpu.trace_stop"() : () -> ()
    %51 = arith.truncf %50 : vector<8x8x8xf32> to vector<8x8x8xbf16>
    %c0_21 = arith.constant 0 : index
    %c0_22 = arith.constant 0 : index
    %c0_23 = arith.constant 0 : index
    %52 = vector.load %arg5[%c0_21, %c0_22, %c0_23] : memref<8x8x64xbf16, #tpu.memory_space<vmem>>, vector<8x8x64xbf16>
    "tpu.trace_start"() <{level = 10 : i32, message = "hnd,hdD->hnD"}> : () -> ()
    %cst_24 = arith.constant dense<0.000000e+00> : vector<8x8x64xf32>
    %53 = tpu.matmul %51, %52, %cst_24 {dimension_numbers = #tpu.dot_dimension_numbers<[2], [1], [1], [2], [0, 0, 0, 1, 1, 2], [0], [0]>} : vector<8x8x8xbf16>, vector<8x8x64xbf16>, vector<8x8x64xf32> -> vector<8x8x64xf32>
    "tpu.trace_stop"() : () -> ()
    %cst_25 = arith.constant dense<0.000000e+00> : vector<8x64xf32>
    %54 = vector.multi_reduction <add>, %53, %cst_25 [0] : vector<8x8x64xf32> to vector<8x64xf32>
    %c0_26 = arith.constant 0 : index
    %c0_27 = arith.constant 0 : index
    %55 = vector.load %arg6[%c0_26, %c0_27] : memref<1x64xf32, #tpu.memory_space<vmem>>, vector<1x64xf32>
    %56 = vector.broadcast %55 : vector<1x64xf32> to vector<8x64xf32>
    %57 = arith.addf %54, %56 : vector<8x64xf32>
    %58 = vector.extract_strided_slice %57 {offsets = [0, 0], sizes = [1, 64], strides = [1, 1]} : vector<8x64xf32> to vector<1x64xf32>
    %59 = vector.extract_strided_slice %57 {offsets = [1, 0], sizes = [1, 64], strides = [1, 1]} : vector<8x64xf32> to vector<1x64xf32>
    %60 = vector.extract_strided_slice %57 {offsets = [2, 0], sizes = [1, 64], strides = [1, 1]} : vector<8x64xf32> to vector<1x64xf32>
    %61 = vector.extract_strided_slice %57 {offsets = [3, 0], sizes = [1, 64], strides = [1, 1]} : vector<8x64xf32> to vector<1x64xf32>
    %62 = vector.extract_strided_slice %57 {offsets = [4, 0], sizes = [1, 64], strides = [1, 1]} : vector<8x64xf32> to vector<1x64xf32>
    %63 = vector.extract_strided_slice %57 {offsets = [5, 0], sizes = [1, 64], strides = [1, 1]} : vector<8x64xf32> to vector<1x64xf32>
    %64 = vector.extract_strided_slice %57 {offsets = [6, 0], sizes = [1, 64], strides = [1, 1]} : vector<8x64xf32> to vector<1x64xf32>
    %65 = vector.extract_strided_slice %57 {offsets = [7, 0], sizes = [1, 64], strides = [1, 1]} : vector<8x64xf32> to vector<1x64xf32>
    %66 = tpu.concatenate %58, %59, %60, %61, %62, %63, %64, %65 in 1 : vector<1x64xf32>, vector<1x64xf32>, vector<1x64xf32>, vector<1x64xf32>, vector<1x64xf32>, vector<1x64xf32>, vector<1x64xf32>, vector<1x64xf32> -> vector<1x512xf32>
    %c0_28 = arith.constant 0 : index
    %c0_29 = arith.constant 0 : index
    %c0_30 = arith.constant 0 : index
    %67 = vector.load %arg8[%c0_28, %c0_29, %c0_30] : memref<1x1x512xf32, #tpu.memory_space<vmem>>, vector<1x1x512xf32>
    %68 = vector.shape_cast %67 : vector<1x1x512xf32> to vector<1x512xf32>
    %69 = vector.shape_cast %66 : vector<1x512xf32> to vector<1x1x512xf32>
    tpu.vector_store %arg8[%c0_28, %c0_29, %c0_30], %69 {strides = array<i32>} : memref<1x1x512xf32, #tpu.memory_space<vmem>>, vector<1x1x512xf32>,
    return
  }
  func.func @transform_0(%arg0: i32) -> (i32, i32, i32) {
    %c0_i32 = arith.constant 0 : i32
    %c0_i32_0 = arith.constant 0 : i32
    %c0_i32_1 = arith.constant 0 : i32
    return %arg0, %c0_i32, %c0_i32_0 : i32, i32, i32
  }
  func.func @transform_1(%arg0: i32) -> (i32, i32) {
    %c0_i32 = arith.constant 0 : i32
    %c0_i32_0 = arith.constant 0 : i32
    %c0_i32_1 = arith.constant 0 : i32
    return %c0_i32, %c0_i32_0 : i32, i32
  }
  func.func @transform_2(%arg0: i32) -> (i32, i32) {
    %c0_i32 = arith.constant 0 : i32
    %c0_i32_0 = arith.constant 0 : i32
    %c0_i32_1 = arith.constant 0 : i32
    return %c0_i32, %c0_i32_0 : i32, i32
  }
  func.func @transform_3(%arg0: i32) -> (i32, i32, i32) {
    %c0_i32 = arith.constant 0 : i32
    %c0_i32_0 = arith.constant 0 : i32
    %c0_i32_1 = arith.constant 0 : i32
    %c0_i32_2 = arith.constant 0 : i32
    return %c0_i32, %c0_i32_0, %c0_i32_1 : i32, i32, i32
  }
  func.func @transform_4(%arg0: i32) -> (i32, i32, i32) {
    %c0_i32 = arith.constant 0 : i32
    %c0_i32_0 = arith.constant 0 : i32
    %c0_i32_1 = arith.constant 0 : i32
    %c0_i32_2 = arith.constant 0 : i32
    return %c0_i32, %c0_i32_0, %c0_i32_1 : i32, i32, i32
  }
  func.func @transform_5(%arg0: i32) -> (i32, i32) {
    %c0_i32 = arith.constant 0 : i32
    %c0_i32_0 = arith.constant 0 : i32
    %c0_i32_1 = arith.constant 0 : i32
    return %c0_i32, %c0_i32_0 : i32, i32
  }
  func.func @transform_6(%arg0: i32) -> (i32, i32, i32) {
    %c0_i32 = arith.constant 0 : i32
    %c0_i32_0 = arith.constant 0 : i32
    %c0_i32_1 = arith.constant 0 : i32
    %c0_i32_2 = arith.constant 0 : i32
    return %c0_i32, %c0_i32_0, %c0_i32_1 : i32, i32, i32
  }
  func.func @transform_7(%arg0: i32) -> (i32, i32, i32) {
    %c0_i32 = arith.constant 0 : i32
    %c0_i32_0 = arith.constant 0 : i32
    %c0_i32_1 = arith.constant 0 : i32
    return %arg0, %c0_i32, %c0_i32_0 : i32, i32, i32
  }
}

</mosaic_0001>

<bundles_post_ra>
// kernel: tpu_custom_call.1
= control target key start
LH: loop header
LB: loop body
LE: loop exit
PB: predicated region body
PF: predicated region fallthrough
CT: control target
= control target key end

     0   :  { %12 = vsyncpa [#allocation3], 0  ;;  %s5330_s0 = inlined_call_operand.vmem [shape: f32[2,8,64], index: 0, kind: input, shape index: {}]   ;;  %s5331_s1 = inlined_call_operand.vmem [shape: f32[1,64], index: 1, kind: input, shape index: {}]   ;;  %s5332_s2 = inlined_call_operand.vmem [shape: f32[1,64], index: 2, kind: input, shape index: {}]   ;;  %s5333_s3 = inlined_call_operand.vmem [shape: bf16[24,64,8], index: 3, kind: input, shape index: {}]   ;;  %s5334_s4 = inlined_call_operand.vmem [shape: bf16[8,8,64], index: 4, kind: input, shape index: {}]   ;;  %s5335_s5 = inlined_call_operand.vmem [shape: f32[1,64], index: 5, kind: input, shape index: {}]   ;;  %s5336_s6 = inlined_call_operand.vmem [shape: f32[8,8,8], index: 6, kind: input, shape index: {}]   ;;  %s5337_s7 = inlined_call_operand.hbm [shape: f32[2,1,512], index: 7, kind: output, shape index: {}]  }
   0x1   :  { %14 = vsyncpa [#allocation3 + $0x1], 0  ;;  %s4486_s24 = smov 0   ;;  %s4488_s25 = smov 0  }
   0x2   :  { %s4490_s26 = smov 0   ;;  %s4492_s27 = smov 0  }
   0x3 LB: > { %s4507_s28 = sadd.s32 4294967295, %s4439_s27   ;;  %s3447_s29 = sadd.s32 4294967294, %s4439_s27   ;;  %s4439_s27 = sphi %s4492_s27, %s5343_s27   ;;  %s4435_s26 = sphi %s4490_s26, %s5342_s26   ;;  %s4431_s25 = sphi %s4488_s25, %s5341_s25   ;;  %s4427_s24 = sphi %s4486_s24, %s5340_s24  }
   0x4   : > { %s4511_s30 = sadd.s32 1, %s4439_s27   ;;  %s179_s8 = sadd.s32 1, %s4435_s26 }
   0x5   : > { %s176_s9 = ssub.s32 %s4439_s27, %s4511_s30  ;;  %p189_p0 = scmp.ne.s32.totalorder %s4435_s26, %s4431_s25 }
   0x6   : > { %p177_p1 = scmp.eq.s32.totalorder %s176_s9, 0  ;;  %p190_p2 = scmp.eq.s32.totalorder %s4507_s28, 1 }
   0x7   : > { %p195_p3 = scmp.ne.s32.totalorder %s4431_s25, %s4427_s24  ;;  %p196_p4 = scmp.eq.s32.totalorder %s3447_s29, 1 }
   0x8   : > { %s4522_s10 = scalar_select %p177_p1, %s4435_s26, %s179_s8  }
   0x9   : > { %p4524_p5 = por %p190_p2, %p189_p0  ;;  %p4528_p6 = por %p196_p4, %p195_p3 }
   0xa   : > { %p3450_p7 = scmp.ge.s32.totalorder %s4439_s27, 1  ;;  %p239_p8 = scmp.lt.s32.totalorder %s4439_s27, 3 }
   0xc   : > { %p240_p9 = pnand %p3450_p7, %p239_p8 }
   0xd   : > { %p270_p10 = scmp.lt.s32.totalorder (!%p240_p9), %s4507_s28, 1  ;;  %s4443_s29 = smov (!%p240_p9), 64  }
   0xe   : > { %243 = sbr.rel (%p240_p9) target bundleno = 1701 (0x6a5), region = 48  ;;  %s267_s8 = sand.u32 (!%p240_p9), 1, %s4431_s25  }
   0xf   : > { %s3451_s9 = sshll.u32 (!%p240_p9), %s267_s8, 2  ;;  %s3374_s19 = scalar_lea.sflag (!%p240_p9), [#allocation3], %s267_s8 }
  0x10   : > { %s4445_s21 = smov (!%p240_p9), [#allocation2]  }
  0x11   : > { %s4383_s22 = sshll.u32 (!%p240_p9), %s4445_s21, 4  ;;  %s4384_s22 = int_to_ptr.vmem [resolvable:$false] %s4383_s22 }
  0x13   : > { %s271_s13 = scalar_select %p270_p10, %s4507_s28, 1  ;;  %vm276_vm0 = vcmask 523264   ;;  %v4249_v7 = vld [vmem:[%s5333_s3 + $0x18] sm:$0xff]   ;;  %v4441_v9 = vmov 0.0   ;;  %v4251_v10 = vld [vmem:[%s5333_s3 + $0x10] sm:$0xff]   ;;  %v4253_v12 = vld [vmem:[%s5333_s3 + $0x8] sm:$0xff]  }
  0x14   : > { %v4250_v8 = vld [vmem:[%s5333_s3 + $0x38] sm:$0xff]   ;;  %3774 = vmatprep.subr.bf16.mxu0 %v4441_v9  ;;  %3786 = vmatprep.subr.bf16.mxu1 %v4441_v9  ;;  %v4252_v11 = vld [vmem:[%s5333_s3 + $0x30] sm:$0xff]   ;;  %v4254_v13 = vld [vmem:[%s5333_s3 + $0x28] sm:$0xff]   ;;  %vm4442_vm1 = vmmov 0   ;;  %vm2071_vm2 = vcmask 64512   ;;  %vm2539_vm3 = vcmask 1043456  }
  0x15   : > { %s3452_s14 = sshll.u32 %s271_s13, 3  ;;  %3775 = vmatpush3.bf16.msra.mxu0 %v4249_v7  ;;  %3787 = vmatpush3.bf16.msra.mxu1 %v4250_v8  ;;  %v4255_v14 = vld [vmem:[%s5333_s3] sm:$0xff]   ;;  %v4257_v25 = vld [vmem:[%s5333_s3 + $0x58] sm:$0xff]   ;;  %v4259_v28 = vld [vmem:[%s5333_s3 + $0x50] sm:$0xff]   ;;  %s3605_s13 = sshll.u32 %s4507_s28, 6 }
  0x16   : > { %s273_s17 = scalar_lea.vmem %s5330_s0, %s3452_s14  ;;  %3776 = vmatprep.subr.bf16.mxu0 %v4441_v9  ;;  %3788 = vmatprep.subr.bf16.mxu1 %v4441_v9  ;;  %v4256_v15 = vld [vmem:[%s5333_s3 + $0x20] sm:$0xff]   ;;  %v4258_v26 = vld [vmem:[%s5333_s3 + $0x78] sm:$0xff]   ;;  %v4260_v29 = vld [vmem:[%s5333_s3 + $0x70] sm:$0xff]   ;;  %s269_s14 = scalar_lea.vmem [#allocation2], %s3451_s9 }
  0x17   : > { %v275_v0 = vld [vmem:[%s273_s17] sm:$0xff]  ;;  %3782 = vmatprep.mubr.msk.bf16.mxu0 %vm4442_vm1, %v4441_v9  ;;  %3794 = vmatprep.mubr.msk.bf16.mxu1 %vm4442_vm1, %v4441_v9  ;;  %v4261_v30 = vld [vmem:[%s5333_s3 + $0x48] sm:$0xff]   ;;  %v4265_v34 = vld [vmem:[%s5333_s3 + $0x98] sm:$0xff]   ;;  %s3388_s15 = sshll.u32 %s269_s14, 4  ;;  %s3386_s18 = scalar_lea.hbm %s5337_s7, %s3605_s13  ;;  %s3389_s15 = int_to_ptr.vmem [resolvable:$true] %s3388_s15 }
  0x18   : > { %v277_v1 = vsel %vm276_vm0, %v275_v0, 0.0  ;;  %v3453_v20 = vld [vmem:[%s5331_s1] ss:$0 sm:$0xff]  ;;  %v4262_v31 = vld [vmem:[%s5333_s3 + $0x68] sm:$0xff]   ;;  %v4266_v35 = vld [vmem:[%s5333_s3 + $0xb8] sm:$0xff]   ;;  %s4379_s20 = scalar_lea.vmem %s3389_s15, 64  ;;  %p4386_p0 = scmp.lt.s32.totalorder %s3389_s15, %s4384_s22 }
  0x19   : > { %278 = vadd.xlane.f32.xlu0 %v277_v1  ;;  %3777 = vmatpush3.bf16.msra.mxu0 %v4251_v10  ;;  %v3454_v22 = vld [vmem:[%s5332_s2] ss:$0 sm:$0xff]  ;;  %v4267_v36 = vld [vmem:[%s5333_s3 + $0x90] sm:$0xff]   ;;  %v4269_v38 = vld [vmem:[%s5333_s3 + $0x88] sm:$0xff]   ;;  %p4380_p11 = scmp.ne.s32.totalorder %s3389_s15, %s4379_s20  ;;  %s4385_s28 = scalar_lea.vmem %s4384_s22, 128 }
  0x1a   : > { %3789 = vmatpush3.bf16.msra.mxu1 %v4252_v11  ;;  %3778 = vmatprep.subr.bf16.mxu0 %v4441_v9  ;;  %v4263_v32 = vld [vmem:[%s5333_s3 + $0x40] sm:$0xff]   ;;  %v4268_v37 = vld [vmem:[%s5333_s3 + $0xb0] sm:$0xff]   ;;  %v4270_v39 = vld [vmem:[%s5333_s3 + $0xa8] sm:$0xff]   ;;  %p4387_p1 = scmp.lt.s32.totalorder %s4385_s28, %s4379_s20 }
  0x1b   : > { %3790 = vmatprep.subr.bf16.mxu1 %v4441_v9  ;;  %v4264_v33 = vld [vmem:[%s5333_s3 + $0x60] sm:$0xff]   ;;  %v4273_v42 = vld [vmem:[%s5333_s3 + $0xd8] sm:$0xff]   ;;  %v4275_v44 = vld [vmem:[%s5333_s3 + $0xd0] sm:$0xff]   ;;  %p4381_p12 = pnand %p4380_p11, %p4524_p5 }
  0x1c   : > { %v4271_v40 = vld [vmem:[%s5333_s3 + $0x80] sm:$0xff]   ;;  %v4274_v43 = vld [vmem:[%s5333_s3 + $0xf8] sm:$0xff]   ;;  %v4276_v45 = vld [vmem:[%s5333_s3 + $0xf0] sm:$0xff]   ;;  %p4388_p2 = por %p4387_p1, %p4386_p0 }
  0x1d   : > { %3779 = vmatpush3.bf16.msra.mxu0 %v4253_v12  ;;  %v4272_v41 = vld [vmem:[%s5333_s3 + $0xa0] sm:$0xff]   ;;  %v4277_v46 = vld [vmem:[%s5333_s3 + $0xc8] sm:$0xff]   ;;  %v4281_v50 = vld [vmem:[%s5333_s3 + $0x118] sm:$0xff]   ;;  %p4382_p13 = pneg %p4381_p12 }
  0x1e   : > { %3791 = vmatpush3.bf16.msra.mxu1 %v4254_v13  ;;  %3780 = vmatprep.subr.bf16.mxu0 %v4441_v9  ;;  %v4278_v47 = vld [vmem:[%s5333_s3 + $0xe8] sm:$0xff]   ;;  %v4279_v48 = vld [vmem:[%s5333_s3 + $0xc0] sm:$0xff]   ;;  %v4282_v51 = vld [vmem:[%s5333_s3 + $0x138] sm:$0xff]  }
  0x1f   : > { %3792 = vmatprep.subr.bf16.mxu1 %v4441_v9  ;;  %v4280_v49 = vld [vmem:[%s5333_s3 + $0xe0] sm:$0xff]   ;;  %v4283_v52 = vld [vmem:[%s5333_s3 + $0x110] sm:$0xff]   ;;  %v4285_v54 = vld [vmem:[%s5333_s3 + $0x108] sm:$0xff]   ;;  %p4389_p3 = pnand %p4388_p2, %p4382_p13 }
  0x20   : > { %v4284_v53 = vld [vmem:[%s5333_s3 + $0x130] sm:$0xff]   ;;  %v4286_v55 = vld [vmem:[%s5333_s3 + $0x128] sm:$0xff]   ;;  %v4287_v56 = vld [vmem:[%s5333_s3 + $0x100] sm:$0xff]  }
  0x21   : > { %3781 = vmatpush3.bf16.msra.mxu0 %v4255_v14  ;;  %v4288_v57 = vld [vmem:[%s5333_s3 + $0x120] sm:$0xff]   ;;  %v4289_v58 = vld [vmem:[%s5333_s3 + $0x158] sm:$0xff]   ;;  %v4291_v60 = vld [vmem:[%s5333_s3 + $0x150] sm:$0xff]  }
  0x22   : > { %3793 = vmatpush3.bf16.msra.mxu1 %v4256_v15  ;;  %3798 = vmatprep.subr.bf16.mxu0 %v4441_v9  ;;  %v4290_v59 = vld [vmem:[%s5333_s3 + $0x178] sm:$0xff]   ;;  %v4292_v61 = vld [vmem:[%s5333_s3 + $0x170] sm:$0xff]   ;;  %v4293_v62 = vld [vmem:[%s5333_s3 + $0x148] sm:$0xff]  }
  0x23   : > { %3810 = vmatprep.subr.bf16.mxu1 %v4441_v9  ;;  %v4294_v63 = vld [vmem:[%s5333_s3 + $0x168] sm:$0xff]   ;;  %v4296_v1 = vld [vmem:[%s5333_s3 + $0x160] sm:$0xff]   ;;  %v4305_v11 = vld [vmem:[%s5333_s3 + $0x1d8] sm:$0xff]  }
  0x24   : > { %v4302_v7 = vld [vmem:[%s5333_s3 + $0x1a8] sm:$0xff]   ;;  %v4303_v8 = vld [vmem:[%s5333_s3 + $0x180] sm:$0xff]   ;;  %v4306_v12 = vld [vmem:[%s5333_s3 + $0x1f8] sm:$0xff]  }
  0x25   : > { %v4304_v10 = vld [vmem:[%s5333_s3 + $0x1a0] sm:$0xff]   ;;  %v4307_v13 = vld [vmem:[%s5333_s3 + $0x1d0] sm:$0xff]   ;;  %v4309_v15 = vld [vmem:[%s5333_s3 + $0x1c8] sm:$0xff]  }
  0x26   : > { %v4308_v14 = vld [vmem:[%s5333_s3 + $0x1f0] sm:$0xff]  }
  0xa2   : > { %v279_v2 = vpop.xlane.xlu0 %278 }
  0xa3   : > { %v281_v3 = vmul.f32 0.015625, %v279_v2  ;;  %v4297_v2 = vld [vmem:[%s5333_s3 + $0x198] sm:$0xff]  }
  0xa5   : > { %v282_v4 = vsub.f32 %v275_v0, %v281_v3  ;;  %v4295_v0 = vld [vmem:[%s5333_s3 + $0x140] sm:$0xff]   ;;  %v4298_v3 = vld [vmem:[%s5333_s3 + $0x1b8] sm:$0xff]  }
  0xa7   : > { %v283_v5 = vmul.f32 %v282_v4, %v282_v4 }
  0xa9   : > { %v284_v6 = vsel %vm276_vm0, %v283_v5, 0.0  ;;  %v4300_v5 = vld [vmem:[%s5333_s3 + $0x1b0] sm:$0xff]  }
  0xaa   : > { %285 = vadd.xlane.f32.xlu0 %v284_v6  ;;  %v4301_v6 = vld [vmem:[%s5333_s3 + $0x188] sm:$0xff]  }
 0x133   : > { %v286_v16 = vpop.xlane.xlu0 %285 }
 0x134   : > { %v287_v17 = vmul.f32 0.015625, %v286_v16  ;;  %v4310_v16 = vld [vmem:[%s5333_s3 + $0x1e8] sm:$0xff]  }
 0x136   : > { %v288_v18 = vadd.f32 1e-05, %v287_v17  ;;  %v4311_v17 = vld [vmem:[%s5333_s3 + $0x1c0] sm:$0xff]  }
 0x138   : > { %4345 = vrsqrt.f32 %v288_v18  ;;  %v4312_v18 = vld [vmem:[%s5333_s3 + $0x1e0] sm:$0xff]  }
 0x145   : > { %v4346_v19 = vpop.eup %4345 }
 0x146   : > { %v290_v21 = vmul.f32 %v4346_v19, %v282_v4  ;;  %v4299_v4 = vld [vmem:[%s5333_s3 + $0x190] sm:$0xff]   ;;  %v4313_v19 = vld [vmem:[%s5333_s3 + $0x218] sm:$0xff]  }
 0x148   : > { %v298_v23 = vmul.f32 %v3453_v20, %v290_v21  ;;  %v4314_v20 = vld [vmem:[%s5333_s3 + $0x238] sm:$0xff]   ;;  %v4315_v21 = vld [vmem:[%s5333_s3 + $0x210] sm:$0xff]  }
 0x14a   : > { %v306_v24 = vadd.f32 %v3454_v22, %v298_v23  ;;  %v4316_v22 = vld [vmem:[%s5333_s3 + $0x230] sm:$0xff]   ;;  %v4317_v23 = vld [vmem:[%s5333_s3 + $0x208] sm:$0xff]  }
 0x14c   : > { %v4591_v27 = vpack.c.bf16 %v306_v24, %v306_v24  ;;  %v4318_v24 = vld [vmem:[%s5333_s3 + $0x228] sm:$0xff]  }
 0x14e   : > { %3783 = vmatmul.mubr.msk.bf16.vlgmr.msra.gmra.mxu0 %vm276_vm0, %v4591_v27  ;;  %3795 = vmatmul.mubr.msk.bf16.vlgmr.msra.gmra.mxu1 %vm276_vm0, %v4591_v27 }
 0x14f   : > { %3799 = vmatpush3.bf16.msra.mxu0 %v4257_v25  ;;  %3811 = vmatpush3.bf16.msra.mxu1 %v4258_v26  ;;  %v4319_v25 = vld [vmem:[%s5333_s3 + $0x200] sm:$0xff]  }
 0x150   : > { %3800 = vmatprep.subr.bf16.mxu0 %v4441_v9  ;;  %3812 = vmatprep.subr.bf16.mxu1 %v4441_v9  ;;  %v4320_v26 = vld [vmem:[%s5333_s3 + $0x220] sm:$0xff]  }
 0x151   : > { %3806 = vmatprep.mubr.msk.bf16.mxu0 %vm4442_vm1, %v4441_v9  ;;  %3818 = vmatprep.mubr.msk.bf16.mxu1 %vm4442_vm1, %v4441_v9 }
 0x153   : > { %3801 = vmatpush3.bf16.msra.mxu0 %v4259_v28  ;;  %3813 = vmatpush3.bf16.msra.mxu1 %v4260_v29  ;;  %v4321_v28 = vld [vmem:[%s5333_s3 + $0x258] sm:$0xff]  }
 0x154   : > { %3802 = vmatprep.subr.bf16.mxu0 %v4441_v9  ;;  %3814 = vmatprep.subr.bf16.mxu1 %v4441_v9  ;;  %v4322_v29 = vld [vmem:[%s5333_s3 + $0x278] sm:$0xff]  }
 0x157   : > { %3803 = vmatpush3.bf16.msra.mxu0 %v4261_v30  ;;  %3815 = vmatpush3.bf16.msra.mxu1 %v4262_v31  ;;  %v4323_v30 = vld [vmem:[%s5333_s3 + $0x250] sm:$0xff]  }
 0x158   : > { %3804 = vmatprep.subr.bf16.mxu0 %v4441_v9  ;;  %3816 = vmatprep.subr.bf16.mxu1 %v4441_v9  ;;  %v4324_v31 = vld [vmem:[%s5333_s3 + $0x270] sm:$0xff]  }
 0x15b   : > { %3805 = vmatpush3.bf16.msra.mxu0 %v4263_v32  ;;  %3817 = vmatpush3.bf16.msra.mxu1 %v4264_v33  ;;  %v4325_v32 = vld [vmem:[%s5333_s3 + $0x248] sm:$0xff]  }
 0x15c   : > { %3822 = vmatprep.subr.bf16.mxu0 %v4441_v9  ;;  %3834 = vmatprep.subr.bf16.mxu1 %v4441_v9  ;;  %v4326_v33 = vld [vmem:[%s5333_s3 + $0x268] sm:$0xff]  }
 0x15e   : > { %3807 = vmatmul.mubr.msk.bf16.vlgmr.msra.gmra.mxu0 %vm276_vm0, %v4591_v27  ;;  %3819 = vmatmul.mubr.msk.bf16.vlgmr.msra.gmra.mxu1 %vm276_vm0, %v4591_v27 }
 0x15f   : > { %3823 = vmatpush3.bf16.msra.mxu0 %v4265_v34  ;;  %3835 = vmatpush3.bf16.msra.mxu1 %v4266_v35  ;;  %v4327_v34 = vld [vmem:[%s5333_s3 + $0x240] sm:$0xff]  }
 0x160   : > { %3824 = vmatprep.subr.bf16.mxu0 %v4441_v9  ;;  %3836 = vmatprep.subr.bf16.mxu1 %v4441_v9  ;;  %v4328_v35 = vld [vmem:[%s5333_s3 + $0x260] sm:$0xff]  }
 0x161   : > { %3830 = vmatprep.mubr.msk.bf16.mxu0 %vm4442_vm1, %v4441_v9  ;;  %3842 = vmatprep.mubr.msk.bf16.mxu1 %vm4442_vm1, %v4441_v9 }
 0x163   : > { %3825 = vmatpush3.bf16.msra.mxu0 %v4267_v36  ;;  %3837 = vmatpush3.bf16.msra.mxu1 %v4268_v37  ;;  %v4329_v36 = vld [vmem:[%s5333_s3 + $0x298] sm:$0xff]  }
 0x164   : > { %3826 = vmatprep.subr.bf16.mxu0 %v4441_v9  ;;  %3838 = vmatprep.subr.bf16.mxu1 %v4441_v9  ;;  %v4330_v37 = vld [vmem:[%s5333_s3 + $0x2b8] sm:$0xff]  }
 0x167   : > { %3827 = vmatpush3.bf16.msra.mxu0 %v4269_v38  ;;  %3839 = vmatpush3.bf16.msra.mxu1 %v4270_v39  ;;  %v4331_v38 = vld [vmem:[%s5333_s3 + $0x290] sm:$0xff]  }
 0x168   : > { %3828 = vmatprep.subr.bf16.mxu0 %v4441_v9  ;;  %3840 = vmatprep.subr.bf16.mxu1 %v4441_v9  ;;  %v4332_v39 = vld [vmem:[%s5333_s3 + $0x2b0] sm:$0xff]  }
 0x16b   : > { %3829 = vmatpush3.bf16.msra.mxu0 %v4271_v40  ;;  %3841 = vmatpush3.bf16.msra.mxu1 %v4272_v41  ;;  %v4333_v40 = vld [vmem:[%s5333_s3 + $0x288] sm:$0xff]  }
 0x16c   : > { %3846 = vmatprep.subr.bf16.mxu0 %v4441_v9  ;;  %3858 = vmatprep.subr.bf16.mxu1 %v4441_v9  ;;  %v4334_v41 = vld [vmem:[%s5333_s3 + $0x2a8] sm:$0xff]  }
 0x16e   : > { %3831 = vmatmul.mubr.msk.bf16.vlgmr.msra.gmra.mxu0 %vm276_vm0, %v4591_v27  ;;  %3843 = vmatmul.mubr.msk.bf16.vlgmr.msra.gmra.mxu1 %vm276_vm0, %v4591_v27 }
 0x16f   : > { %3847 = vmatpush3.bf16.msra.mxu0 %v4273_v42  ;;  %3859 = vmatpush3.bf16.msra.mxu1 %v4274_v43  ;;  %v4335_v42 = vld [vmem:[%s5333_s3 + $0x280] sm:$0xff]  }
 0x170   : > { %3848 = vmatprep.subr.bf16.mxu0 %v4441_v9  ;;  %3860 = vmatprep.subr.bf16.mxu1 %v4441_v9  ;;  %v4336_v43 = vld [vmem:[%s5333_s3 + $0x2a0] sm:$0xff]  }
 0x171   : > { %3854 = vmatprep.mubr.msk.bf16.mxu0 %vm4442_vm1, %v4441_v9  ;;  %3866 = vmatprep.mubr.msk.bf16.mxu1 %vm4442_vm1, %v4441_v9 }
 0x173   : > { %3849 = vmatpush3.bf16.msra.mxu0 %v4275_v44  ;;  %3861 = vmatpush3.bf16.msra.mxu1 %v4276_v45  ;;  %v4337_v44 = vld [vmem:[%s5333_s3 + $0x2d8] sm:$0xff]  }
 0x174   : > { %3850 = vmatprep.subr.bf16.mxu0 %v4441_v9  ;;  %3862 = vmatprep.subr.bf16.mxu1 %v4441_v9  ;;  %v4338_v45 = vld [vmem:[%s5333_s3 + $0x2f8] sm:$0xff]  }
 0x177   : > { %3851 = vmatpush3.bf16.msra.mxu0 %v4277_v46  ;;  %3863 = vmatpush3.bf16.msra.mxu1 %v4278_v47  ;;  %v4339_v46 = vld [vmem:[%s5333_s3 + $0x2d0] sm:$0xff]  }
 0x178   : > { %3852 = vmatprep.subr.bf16.mxu0 %v4441_v9  ;;  %3864 = vmatprep.subr.bf16.mxu1 %v4441_v9  ;;  %v4340_v47 = vld [vmem:[%s5333_s3 + $0x2f0] sm:$0xff]  }
 0x17b   : > { %3853 = vmatpush3.bf16.msra.mxu0 %v4279_v48  ;;  %3865 = vmatpush3.bf16.msra.mxu1 %v4280_v49  ;;  %v4341_v48 = vld [vmem:[%s5333_s3 + $0x2c8] sm:$0xff]  }
 0x17c   : > { %3870 = vmatprep.subr.bf16.mxu0 %v4441_v9  ;;  %3882 = vmatprep.subr.bf16.mxu1 %v4441_v9  ;;  %v4342_v49 = vld [vmem:[%s5333_s3 + $0x2e8] sm:$0xff]  }
 0x17e   : > { %3855 = vmatmul.mubr.msk.bf16.vlgmr.msra.gmra.mxu0 %vm276_vm0, %v4591_v27  ;;  %3867 = vmatmul.mubr.msk.bf16.vlgmr.msra.gmra.mxu1 %vm276_vm0, %v4591_v27 }
 0x17f   : > { %3871 = vmatpush3.bf16.msra.mxu0 %v4281_v50  ;;  %3883 = vmatpush3.bf16.msra.mxu1 %v4282_v51  ;;  %v4343_v50 = vld [vmem:[%s5333_s3 + $0x2c0] sm:$0xff]  }
 0x180   : > { %3872 = vmatprep.subr.bf16.mxu0 %v4441_v9  ;;  %3884 = vmatprep.subr.bf16.mxu1 %v4441_v9  ;;  %v4344_v51 = vld [vmem:[%s5333_s3 + $0x2e0] sm:$0xff]  }
 0x181   : > { %3878 = vmatprep.mubr.msk.bf16.mxu0 %vm4442_vm1, %v4441_v9  ;;  %3890 = vmatprep.mubr.msk.bf16.mxu1 %vm4442_vm1, %v4441_v9 }
 0x183   : > { %3873 = vmatpush3.bf16.msra.mxu0 %v4283_v52  ;;  %3885 = vmatpush3.bf16.msra.mxu1 %v4284_v53 }
 0x184   : > { %3874 = vmatprep.subr.bf16.mxu0 %v4441_v9  ;;  %3886 = vmatprep.subr.bf16.mxu1 %v4441_v9 }
 0x187   : > { %3875 = vmatpush3.bf16.msra.mxu0 %v4285_v54  ;;  %3887 = vmatpush3.bf16.msra.mxu1 %v4286_v55 }
 0x188   : > { %3876 = vmatprep.subr.bf16.mxu0 %v4441_v9  ;;  %3888 = vmatprep.subr.bf16.mxu1 %v4441_v9 }
 0x18b   : > { %3877 = vmatpush3.bf16.msra.mxu0 %v4287_v56  ;;  %3889 = vmatpush3.bf16.msra.mxu1 %v4288_v57 }
 0x18c   : > { %3894 = vmatprep.subr.bf16.mxu0 %v4441_v9  ;;  %3906 = vmatprep.subr.bf16.mxu1 %v4441_v9 }
 0x18e   : > { %3879 = vmatmul.mubr.msk.bf16.vlgmr.msra.gmra.mxu0 %vm276_vm0, %v4591_v27  ;;  %3891 = vmatmul.mubr.msk.bf16.vlgmr.msra.gmra.mxu1 %vm276_vm0, %v4591_v27 }
 0x18f   : > { %3895 = vmatpush3.bf16.msra.mxu0 %v4289_v58  ;;  %3907 = vmatpush3.bf16.msra.mxu1 %v4290_v59 }
 0x190   : > { %3896 = vmatprep.subr.bf16.mxu0 %v4441_v9  ;;  %3908 = vmatprep.subr.bf16.mxu1 %v4441_v9 }
 0x191   : > { %3902 = vmatprep.mubr.msk.bf16.mxu0 %vm4442_vm1, %v4441_v9  ;;  %3914 = vmatprep.mubr.msk.bf16.mxu1 %vm4442_vm1, %v4441_v9 }
 0x193   : > { %3897 = vmatpush3.bf16.msra.mxu0 %v4291_v60  ;;  %3909 = vmatpush3.bf16.msra.mxu1 %v4292_v61 }
 0x194   : > { %3898 = vmatprep.subr.bf16.mxu0 %v4441_v9  ;;  %3910 = vmatprep.subr.bf16.mxu1 %v4441_v9 }
 0x197   : > { %3899 = vmatpush3.bf16.msra.mxu0 %v4293_v62  ;;  %3911 = vmatpush3.bf16.msra.mxu1 %v4294_v63 }
 0x198   : > { %3900 = vmatprep.subr.bf16.mxu0 %v4441_v9  ;;  %3912 = vmatprep.subr.bf16.mxu1 %v4441_v9 }
 0x19b   : > { %3901 = vmatpush3.bf16.msra.mxu0 %v4295_v0  ;;  %3913 = vmatpush3.bf16.msra.mxu1 %v4296_v1 }
 0x19c   : > { %3918 = vmatprep.subr.bf16.mxu0 %v4441_v9  ;;  %3930 = vmatprep.subr.bf16.mxu1 %v4441_v9 }
 0x19e   : > { %3903 = vmatmul.mubr.msk.bf16.vlgmr.msra.gmra.mxu0 %vm276_vm0, %v4591_v27  ;;  %3915 = vmatmul.mubr.msk.bf16.vlgmr.msra.gmra.mxu1 %vm276_vm0, %v4591_v27 }
 0x19f   : > { %3919 = vmatpush3.bf16.msra.mxu0 %v4297_v2  ;;  %3931 = vmatpush3.bf16.msra.mxu1 %v4298_v3 }
 0x1a0   : > { %3920 = vmatprep.subr.bf16.mxu0 %v4441_v9  ;;  %3932 = vmatprep.subr.bf16.mxu1 %v4441_v9 }
 0x1a1   : > { %3926 = vmatprep.mubr.msk.bf16.mxu0 %vm4442_vm1, %v4441_v9  ;;  %3938 = vmatprep.mubr.msk.bf16.mxu1 %vm4442_vm1, %v4441_v9 }
 0x1a3   : > { %3921 = vmatpush3.bf16.msra.mxu0 %v4299_v4  ;;  %3933 = vmatpush3.bf16.msra.mxu1 %v4300_v5 }
 0x1a4   : > { %3922 = vmatprep.subr.bf16.mxu0 %v4441_v9  ;;  %3934 = vmatprep.subr.bf16.mxu1 %v4441_v9 }
 0x1a7   : > { %3923 = vmatpush3.bf16.msra.mxu0 %v4301_v6  ;;  %3935 = vmatpush3.bf16.msra.mxu1 %v4302_v7 }
 0x1a8   : > { %3924 = vmatprep.subr.bf16.mxu0 %v4441_v9  ;;  %3936 = vmatprep.subr.bf16.mxu1 %v4441_v9 }
 0x1ab   : > { %3925 = vmatpush3.bf16.msra.mxu0 %v4303_v8  ;;  %3937 = vmatpush3.bf16.msra.mxu1 %v4304_v10 }
 0x1ac   : > { %3942 = vmatprep.subr.bf16.mxu0 %v4441_v9  ;;  %3954 = vmatprep.subr.bf16.mxu1 %v4441_v9 }
 0x1ae   : > { %3927 = vmatmul.mubr.msk.bf16.vlgmr.msra.gmra.mxu0 %vm276_vm0, %v4591_v27  ;;  %3939 = vmatmul.mubr.msk.bf16.vlgmr.msra.gmra.mxu1 %vm276_vm0, %v4591_v27 }
 0x1af   : > { %3943 = vmatpush3.bf16.msra.mxu0 %v4305_v11  ;;  %3955 = vmatpush3.bf16.msra.mxu1 %v4306_v12 }
 0x1b0   : > { %3944 = vmatprep.subr.bf16.mxu0 %v4441_v9  ;;  %3956 = vmatprep.subr.bf16.mxu1 %v4441_v9 }
 0x1b1   : > { %3950 = vmatprep.mubr.msk.bf16.mxu0 %vm4442_vm1, %v4441_v9  ;;  %3962 = vmatprep.mubr.msk.bf16.mxu1 %vm4442_vm1, %v4441_v9 }
 0x1b3   : > { %3945 = vmatpush3.bf16.msra.mxu0 %v4307_v13  ;;  %3957 = vmatpush3.bf16.msra.mxu1 %v4308_v14 }
 0x1b4   : > { %3946 = vmatprep.subr.bf16.mxu0 %v4441_v9  ;;  %3958 = vmatprep.subr.bf16.mxu1 %v4441_v9 }
 0x1b7   : > { %3947 = vmatpush3.bf16.msra.mxu0 %v4309_v15  ;;  %3959 = vmatpush3.bf16.msra.mxu1 %v4310_v16 }
 0x1b8   : > { %3948 = vmatprep.subr.bf16.mxu0 %v4441_v9  ;;  %3960 = vmatprep.subr.bf16.mxu1 %v4441_v9 }
 0x1bb   : > { %3949 = vmatpush3.bf16.msra.mxu0 %v4311_v17  ;;  %3961 = vmatpush3.bf16.msra.mxu1 %v4312_v18 }
 0x1bc   : > { %3966 = vmatprep.subr.bf16.mxu0 %v4441_v9  ;;  %3978 = vmatprep.subr.bf16.mxu1 %v4441_v9 }
 0x1be   : > { %3951 = vmatmul.mubr.msk.bf16.vlgmr.msra.gmra.mxu0 %vm276_vm0, %v4591_v27  ;;  %3963 = vmatmul.mubr.msk.bf16.vlgmr.msra.gmra.mxu1 %vm276_vm0, %v4591_v27 }
 0x1bf   : > { %3967 = vmatpush3.bf16.msra.mxu0 %v4313_v19  ;;  %3979 = vmatpush3.bf16.msra.mxu1 %v4314_v20 }
 0x1c0   : > { %3968 = vmatprep.subr.bf16.mxu0 %v4441_v9  ;;  %3980 = vmatprep.subr.bf16.mxu1 %v4441_v9 }
 0x1c1   : > { %3974 = vmatprep.mubr.msk.bf16.mxu0 %vm4442_vm1, %v4441_v9  ;;  %3986 = vmatprep.mubr.msk.bf16.mxu1 %vm4442_vm1, %v4441_v9 }
 0x1c3   : > { %3969 = vmatpush3.bf16.msra.mxu0 %v4315_v21  ;;  %3981 = vmatpush3.bf16.msra.mxu1 %v4316_v22 }
 0x1c4   : > { %3970 = vmatprep.subr.bf16.mxu0 %v4441_v9  ;;  %3982 = vmatprep.subr.bf16.mxu1 %v4441_v9 }
 0x1c7   : > { %3971 = vmatpush3.bf16.msra.mxu0 %v4317_v23  ;;  %3983 = vmatpush3.bf16.msra.mxu1 %v4318_v24 }
 0x1c8   : > { %3972 = vmatprep.subr.bf16.mxu0 %v4441_v9  ;;  %3984 = vmatprep.subr.bf16.mxu1 %v4441_v9 }
 0x1cb   : > { %3973 = vmatpush3.bf16.msra.mxu0 %v4319_v25  ;;  %3985 = vmatpush3.bf16.msra.mxu1 %v4320_v26 }
 0x1cc   : > { %3990 = vmatprep.subr.bf16.mxu0 %v4441_v9  ;;  %4002 = vmatprep.subr.bf16.mxu1 %v4441_v9 }
 0x1ce   : > { %3975 = vmatmul.mubr.msk.bf16.vlgmr.msra.gmra.mxu0 %vm276_vm0, %v4591_v27  ;;  %3987 = vmatmul.mubr.msk.bf16.vlgmr.msra.gmra.mxu1 %vm276_vm0, %v4591_v27 }
 0x1cf   : > { %3991 = vmatpush3.bf16.msra.mxu0 %v4321_v28  ;;  %4003 = vmatpush3.bf16.msra.mxu1 %v4322_v29 }
 0x1d0   : > { %3992 = vmatprep.subr.bf16.mxu0 %v4441_v9  ;;  %4004 = vmatprep.subr.bf16.mxu1 %v4441_v9 }
 0x1d1   : > { %3998 = vmatprep.mubr.msk.bf16.mxu0 %vm4442_vm1, %v4441_v9  ;;  %4010 = vmatprep.mubr.msk.bf16.mxu1 %vm4442_vm1, %v4441_v9 }
 0x1d3   : > { %3993 = vmatpush3.bf16.msra.mxu0 %v4323_v30  ;;  %4005 = vmatpush3.bf16.msra.mxu1 %v4324_v31 }
 0x1d4   : > { %3994 = vmatprep.subr.bf16.mxu0 %v4441_v9  ;;  %4006 = vmatprep.subr.bf16.mxu1 %v4441_v9 }
 0x1d7   : > { %3995 = vmatpush3.bf16.msra.mxu0 %v4325_v32  ;;  %4007 = vmatpush3.bf16.msra.mxu1 %v4326_v33 }
 0x1d8   : > { %3996 = vmatprep.subr.bf16.mxu0 %v4441_v9  ;;  %4008 = vmatprep.subr.bf16.mxu1 %v4441_v9 }
 0x1db   : > { %3997 = vmatpush3.bf16.msra.mxu0 %v4327_v34  ;;  %4009 = vmatpush3.bf16.msra.mxu1 %v4328_v35 }
 0x1dc   : > { %4014 = vmatprep.subr.bf16.mxu0 %v4441_v9  ;;  %4026 = vmatprep.subr.bf16.mxu1 %v4441_v9 }
 0x1de   : > { %3999 = vmatmul.mubr.msk.bf16.vlgmr.msra.gmra.mxu0 %vm276_vm0, %v4591_v27  ;;  %4011 = vmatmul.mubr.msk.bf16.vlgmr.msra.gmra.mxu1 %vm276_vm0, %v4591_v27 }
 0x1df   : > { %4015 = vmatpush3.bf16.msra.mxu0 %v4329_v36  ;;  %4027 = vmatpush3.bf16.msra.mxu1 %v4330_v37 }
 0x1e0   : > { %4016 = vmatprep.subr.bf16.mxu0 %v4441_v9  ;;  %4028 = vmatprep.subr.bf16.mxu1 %v4441_v9 }
 0x1e1   : > { %4022 = vmatprep.mubr.msk.bf16.mxu0 %vm4442_vm1, %v4441_v9  ;;  %4034 = vmatprep.mubr.msk.bf16.mxu1 %vm4442_vm1, %v4441_v9 }
 0x1e3   : > { %4017 = vmatpush3.bf16.msra.mxu0 %v4331_v38  ;;  %4029 = vmatpush3.bf16.msra.mxu1 %v4332_v39 }
 0x1e4   : > { %4018 = vmatprep.subr.bf16.mxu0 %v4441_v9  ;;  %4030 = vmatprep.subr.bf16.mxu1 %v4441_v9 }
 0x1e7   : > { %4019 = vmatpush3.bf16.msra.mxu0 %v4333_v40  ;;  %4031 = vmatpush3.bf16.msra.mxu1 %v4334_v41 }
 0x1e8   : > { %4020 = vmatprep.subr.bf16.mxu0 %v4441_v9  ;;  %4032 = vmatprep.subr.bf16.mxu1 %v4441_v9 }
 0x1eb   : > { %4021 = vmatpush3.bf16.msra.mxu0 %v4335_v42  ;;  %4033 = vmatpush3.bf16.msra.mxu1 %v4336_v43 }
 0x1ec   : > { %4038 = vmatprep.subr.bf16.mxu0 %v4441_v9  ;;  %4050 = vmatprep.subr.bf16.mxu1 %v4441_v9 }
 0x1ee   : > { %4023 = vmatmul.mubr.msk.bf16.vlgmr.msra.gmra.mxu0 %vm276_vm0, %v4591_v27  ;;  %4035 = vmatmul.mubr.msk.bf16.vlgmr.msra.gmra.mxu1 %vm276_vm0, %v4591_v27 }
 0x1ef   : > { %4039 = vmatpush3.bf16.msra.mxu0 %v4337_v44  ;;  %4051 = vmatpush3.bf16.msra.mxu1 %v4338_v45 }
 0x1f0   : > { %4040 = vmatprep.subr.bf16.mxu0 %v4441_v9  ;;  %4052 = vmatprep.subr.bf16.mxu1 %v4441_v9 }
 0x1f1   : > { %4046 = vmatprep.mubr.msk.bf16.mxu0 %vm4442_vm1, %v4441_v9  ;;  %4058 = vmatprep.mubr.msk.bf16.mxu1 %vm4442_vm1, %v4441_v9 }
 0x1f3   : > { %4041 = vmatpush3.bf16.msra.mxu0 %v4339_v46  ;;  %4053 = vmatpush3.bf16.msra.mxu1 %v4340_v47 }
 0x1f4   : > { %4042 = vmatprep.subr.bf16.mxu0 %v4441_v9  ;;  %4054 = vmatprep.subr.bf16.mxu1 %v4441_v9 }
 0x1f7   : > { %4043 = vmatpush3.bf16.msra.mxu0 %v4341_v48  ;;  %4055 = vmatpush3.bf16.msra.mxu1 %v4342_v49 }
 0x1f8   : > { %4044 = vmatprep.subr.bf16.mxu0 %v4441_v9  ;;  %4056 = vmatprep.subr.bf16.mxu1 %v4441_v9 }
 0x1fb   : > { %4045 = vmatpush3.bf16.msra.mxu0 %v4343_v50  ;;  %4057 = vmatpush3.bf16.msra.mxu1 %v4344_v51 }
 0x1fc   : > { %4062 = vmatprep.subr.bf16.mxu0 %v4441_v9  ;;  %4068 = vmatprep.subr.bf16.mxu1 %v4441_v9 }
 0x1fe   : > { %4047 = vmatmul.mubr.msk.bf16.vlgmr.msra.gmra.mxu0 %vm276_vm0, %v4591_v27  ;;  %4059 = vmatmul.mubr.msk.bf16.vlgmr.msra.gmra.mxu1 %vm276_vm0, %v4591_v27 }
 0x1ff   : > { %4064 = vmatprep.mubr.msk.bf16.mxu0 %vm4442_vm1, %v4441_v9  ;;  %4070 = vmatprep.mubr.msk.bf16.mxu1 %vm4442_vm1, %v4441_v9 }
 0x20e   : > { %v561_v52 = vpop.f32.mrf.mxu0  ;;  %v625_v53 = vpop.f32.mrf.mxu1 }
 0x20f   : > { %v2039_v33 = vpack.c.bf16 %v561_v52, %v561_v52  ;;  %v2040_v34 = vpack.c.bf16 %v625_v53, %v625_v53 }
 0x210   : > { %v3784_v54 = vpop.f32.mrf.mxu0  ;;  %v3796_v55 = vpop.f32.mrf.mxu1 }
 0x212   : > { %v564_v56 = vpop.f32.mrf.mxu0  ;;  %v628_v57 = vpop.f32.mrf.mxu1 }
 0x214   : > { %v3785_v58 = vpop.f32.mrf.mxu0  ;;  %v3797_v59 = vpop.f32.mrf.mxu1 }
 0x21e   : > { %v5035_v60 = vpop.f32.mrf.mxu0  ;;  %v5037_v61 = vpop.f32.mrf.mxu1 }
 0x21f   : > { %v2041_v47 = vpack.c.bf16 %v5035_v60, %v5035_v60  ;;  %v2042_v48 = vpack.c.bf16 %v5037_v61, %v5037_v61 }
 0x220   : > { %v3808_v62 = vpop.f32.mrf.mxu0  ;;  %v3820_v27 = vpop.f32.mrf.mxu1 }
 0x222   : > { %v692_v63 = vpop.f32.mrf.mxu0  ;;  %v756_v0 = vpop.f32.mrf.mxu1 }
 0x224   : > { %v3809_v1 = vpop.f32.mrf.mxu0  ;;  %v3821_v2 = vpop.f32.mrf.mxu1 }
 0x22e   : > { %v5039_v3 = vpop.f32.mrf.mxu0  ;;  %v5041_v4 = vpop.f32.mrf.mxu1 }
 0x22f   : > { %v2043_v61 = vpack.c.bf16 %v5039_v3, %v5039_v3  ;;  %v2044_v62 = vpack.c.bf16 %v5041_v4, %v5041_v4 }
 0x230   : > { %v3832_v5 = vpop.f32.mrf.mxu0  ;;  %v3844_v6 = vpop.f32.mrf.mxu1 }
 0x232   : > { %v820_v7 = vpop.f32.mrf.mxu0  ;;  %v884_v8 = vpop.f32.mrf.mxu1 }
 0x234   : > { %v3833_v10 = vpop.f32.mrf.mxu0  ;;  %v3845_v11 = vpop.f32.mrf.mxu1 }
 0x23e   : > { %v5043_v12 = vpop.f32.mrf.mxu0  ;;  %v5045_v13 = vpop.f32.mrf.mxu1 }
 0x23f   : > { %v2045_v11 = vpack.c.bf16 %v5043_v12, %v5043_v12 }
 0x240   : > { %v3856_v14 = vpop.f32.mrf.mxu0  ;;  %v3868_v15 = vpop.f32.mrf.mxu1 }
 0x241   : > { %v2046_v14 = vpack.c.bf16 %v5045_v13, %v5045_v13 }
 0x242   : > { %v948_v16 = vpop.f32.mrf.mxu0  ;;  %v1012_v17 = vpop.f32.mrf.mxu1 }
 0x244   : > { %v3857_v18 = vpop.f32.mrf.mxu0  ;;  %v3869_v19 = vpop.f32.mrf.mxu1 }
 0x24e   : > { %v1073_v20 = vpop.f32.mrf.mxu0  ;;  %v1137_v21 = vpop.f32.mrf.mxu1 }
 0x24f   : > { %v2047_v22 = vpack.c.bf16 %v1073_v20, %v1073_v20  ;;  %v2048_v23 = vpack.c.bf16 %v1137_v21, %v1137_v21 }
 0x250   : > { %v3880_v24 = vpop.f32.mrf.mxu0  ;;  %v3892_v25 = vpop.f32.mrf.mxu1 }
 0x251   : > { %v2076_v26 = vsel %vm2071_vm2, %v2047_v22, 0  ;;  %v2122_v28 = vsel %vm2071_vm2, %v2048_v23, 0 }
 0x252   : > { %v1076_v29 = vpop.f32.mrf.mxu0  ;;  %v1140_v30 = vpop.f32.mrf.mxu1  ;;  %4063 = vmatpush3.bf16.xpose.msra.mxu0 %v2076_v26  ;;  %4069 = vmatpush3.bf16.xpose.msra.mxu1 %v2122_v28 }
 0x253   : > { %4074 = vmatprep.subr.bf16.mxu0 %v4441_v9  ;;  %4080 = vmatprep.subr.bf16.mxu1 %v4441_v9 }
 0x254   : > { %v3881_v31 = vpop.f32.mrf.mxu0  ;;  %v3893_v32 = vpop.f32.mrf.mxu1 }
 0x259   : > { %4065 = vmatmul.mubr.msk.bf16.vlgmr.msra.gmra.mxu0 %vm2071_vm2, %v2039_v33  ;;  %4071 = vmatmul.mubr.msk.bf16.vlgmr.msra.gmra.mxu1 %vm2071_vm2, %v2040_v34 }
 0x25a   : > { %4076 = vmatprep.mubr.msk.bf16.mxu0 %vm4442_vm1, %v4441_v9  ;;  %4082 = vmatprep.mubr.msk.bf16.mxu1 %vm4442_vm1, %v4441_v9 }
 0x25e   : > { %v1201_v35 = vpop.f32.mrf.mxu0  ;;  %v1265_v36 = vpop.f32.mrf.mxu1 }
 0x25f   : > { %v2049_v37 = vpack.c.bf16 %v1201_v35, %v1201_v35  ;;  %v2050_v38 = vpack.c.bf16 %v1265_v36, %v1265_v36 }
 0x260   : > { %v3904_v39 = vpop.f32.mrf.mxu0  ;;  %v3916_v40 = vpop.f32.mrf.mxu1 }
 0x261   : > { %v2168_v41 = vsel %vm2071_vm2, %v2049_v37, 0  ;;  %v2214_v42 = vsel %vm2071_vm2, %v2050_v38, 0 }
 0x262   : > { %v1204_v43 = vpop.f32.mrf.mxu0  ;;  %v1268_v44 = vpop.f32.mrf.mxu1  ;;  %4075 = vmatpush3.bf16.xpose.msra.mxu0 %v2168_v41  ;;  %4081 = vmatpush3.bf16.xpose.msra.mxu1 %v2214_v42 }
 0x263   : > { %4086 = vmatprep.subr.bf16.mxu0 %v4441_v9  ;;  %4092 = vmatprep.subr.bf16.mxu1 %v4441_v9 }
 0x264   : > { %v3905_v45 = vpop.f32.mrf.mxu0  ;;  %v3917_v46 = vpop.f32.mrf.mxu1 }
 0x269   : > { %4077 = vmatmul.mubr.msk.bf16.vlgmr.msra.gmra.mxu0 %vm2071_vm2, %v2041_v47  ;;  %4083 = vmatmul.mubr.msk.bf16.vlgmr.msra.gmra.mxu1 %vm2071_vm2, %v2042_v48 }
 0x26a   : > { %4088 = vmatprep.mubr.msk.bf16.mxu0 %vm4442_vm1, %v4441_v9  ;;  %4094 = vmatprep.mubr.msk.bf16.mxu1 %vm4442_vm1, %v4441_v9 }
 0x26e   : > { %v1329_v49 = vpop.f32.mrf.mxu0  ;;  %v1393_v50 = vpop.f32.mrf.mxu1 }
 0x26f   : > { %v2051_v51 = vpack.c.bf16 %v1329_v49, %v1329_v49  ;;  %v2052_v52 = vpack.c.bf16 %v1393_v50, %v1393_v50  ;;  %v2063_v50 = vld [vmem:[%s5336_s6] sm:$0xff] }
 0x270   : > { %v3928_v53 = vpop.f32.mrf.mxu0  ;;  %v3940_v54 = vpop.f32.mrf.mxu1 }
 0x271   : > { %v2260_v55 = vsel %vm2071_vm2, %v2051_v51, 0  ;;  %v2306_v56 = vsel %vm2071_vm2, %v2052_v52, 0  ;;  %v2064_v52 = vld [vmem:[%s5336_s6 + $0x8] sm:$0xff] }
 0x272   : > { %v1332_v57 = vpop.f32.mrf.mxu0  ;;  %v1396_v58 = vpop.f32.mrf.mxu1  ;;  %4087 = vmatpush3.bf16.xpose.msra.mxu0 %v2260_v55  ;;  %4093 = vmatpush3.bf16.xpose.msra.mxu1 %v2306_v56 }
 0x273   : > { %4098 = vmatprep.subr.bf16.mxu0 %v4441_v9  ;;  %4104 = vmatprep.subr.bf16.mxu1 %v4441_v9 }
 0x274   : > { %v3929_v59 = vpop.f32.mrf.mxu0  ;;  %v3941_v60 = vpop.f32.mrf.mxu1 }
 0x279   : > { %4089 = vmatmul.mubr.msk.bf16.vlgmr.msra.gmra.mxu0 %vm2071_vm2, %v2043_v61  ;;  %4095 = vmatmul.mubr.msk.bf16.vlgmr.msra.gmra.mxu1 %vm2071_vm2, %v2044_v62 }
 0x27a   : > { %4100 = vmatprep.mubr.msk.bf16.mxu0 %vm4442_vm1, %v4441_v9  ;;  %4106 = vmatprep.mubr.msk.bf16.mxu1 %vm4442_vm1, %v4441_v9 }
 0x27e   : > { %v1457_v27 = vpop.f32.mrf.mxu0  ;;  %v1521_v63 = vpop.f32.mrf.mxu1 }
 0x27f   : > { %v2053_v0 = vpack.c.bf16 %v1457_v27, %v1457_v27  ;;  %v2054_v1 = vpack.c.bf16 %v1521_v63, %v1521_v63  ;;  %v2065_v63 = vld [vmem:[%s5336_s6 + $0x10] sm:$0xff] }
 0x280   : > { %v3952_v2 = vpop.f32.mrf.mxu0  ;;  %v3964_v5 = vpop.f32.mrf.mxu1 }
 0x281   : > { %v2352_v3 = vsel %vm2071_vm2, %v2053_v0, 0  ;;  %v2398_v4 = vsel %vm2071_vm2, %v2054_v1, 0  ;;  %v2066_v0 = vld [vmem:[%s5336_s6 + $0x18] sm:$0xff] }
 0x282   : > { %v1460_v6 = vpop.f32.mrf.mxu0  ;;  %v1524_v7 = vpop.f32.mrf.mxu1  ;;  %4099 = vmatpush3.bf16.xpose.msra.mxu0 %v2352_v3  ;;  %4105 = vmatpush3.bf16.xpose.msra.mxu1 %v2398_v4 }
 0x283   : > { %4110 = vmatprep.subr.bf16.mxu0 %v4441_v9  ;;  %4116 = vmatprep.subr.bf16.mxu1 %v4441_v9 }
 0x284   : > { %v3953_v8 = vpop.f32.mrf.mxu0  ;;  %v3965_v10 = vpop.f32.mrf.mxu1 }
 0x289   : > { %4101 = vmatmul.mubr.msk.bf16.vlgmr.msra.gmra.mxu0 %vm2071_vm2, %v2045_v11  ;;  %4107 = vmatmul.mubr.msk.bf16.vlgmr.msra.gmra.mxu1 %vm2071_vm2, %v2046_v14 }
 0x28a   : > { %4112 = vmatprep.mubr.msk.bf16.mxu0 %vm4442_vm1, %v4441_v9  ;;  %4118 = vmatprep.mubr.msk.bf16.mxu1 %vm4442_vm1, %v4441_v9 }
 0x28e   : > { %v1585_v15 = vpop.f32.mrf.mxu0  ;;  %v1649_v16 = vpop.f32.mrf.mxu1 }
 0x28f   : > { %v2055_v17 = vpack.c.bf16 %v1585_v15, %v1585_v15  ;;  %v2056_v18 = vpack.c.bf16 %v1649_v16, %v1649_v16  ;;  %v2067_v16 = vld [vmem:[%s5336_s6 + $0x20] sm:$0xff] }
 0x290   : > { %v3976_v19 = vpop.f32.mrf.mxu0  ;;  %v3988_v12 = vpop.f32.mrf.mxu1 }
 0x291   : > { %v2541_v20 = vsel %vm2539_vm3, %v2055_v17, 0  ;;  %v2587_v13 = vsel %vm2539_vm3, %v2056_v18, 0  ;;  %v2068_v17 = vld [vmem:[%s5336_s6 + $0x28] sm:$0xff] }
 0x292   : > { %v1588_v21 = vpop.f32.mrf.mxu0  ;;  %v1652_v22 = vpop.f32.mrf.mxu1  ;;  %4111 = vmatpush3.bf16.msra.mxu0 %v2541_v20  ;;  %4117 = vmatpush3.bf16.msra.mxu1 %v2587_v13 }
 0x293   : > { %4122 = vmatprep.subr.bf16.mxu0 %v4441_v9  ;;  %4128 = vmatprep.subr.bf16.mxu1 %v4441_v9 }
 0x294   : > { %v3977_v23 = vpop.f32.mrf.mxu0  ;;  %v3989_v24 = vpop.f32.mrf.mxu1 }
 0x29e   : > { %v5103_v25 = vpop.f32.mrf.mxu0  ;;  %v5105_v26 = vpop.f32.mrf.mxu1 }
 0x2a0   : > { %v4000_v28 = vpop.f32.mrf.mxu0  ;;  %v4012_v29 = vpop.f32.mrf.mxu1 }
 0x2a2   : > { %v1716_v30 = vpop.f32.mrf.mxu0  ;;  %v1780_v31 = vpop.f32.mrf.mxu1 }
 0x2a3   : > { %v2069_v31 = vld [vmem:[%s5336_s6 + $0x30] sm:$0xff] }
 0x2a4   : > { %v4001_v32 = vpop.f32.mrf.mxu0  ;;  %v4013_v33 = vpop.f32.mrf.mxu1 }
 0x2a5   : > { %v2070_v32 = vld [vmem:[%s5336_s6 + $0x38] sm:$0xff] }
 0x2ae   : > { %v5107_v34 = vpop.f32.mrf.mxu0  ;;  %v5109_v35 = vpop.f32.mrf.mxu1 }
 0x2b0   : > { %v4024_v36 = vpop.f32.mrf.mxu0  ;;  %v4036_v37 = vpop.f32.mrf.mxu1 }
 0x2b2   : > { %v1844_v38 = vpop.f32.mrf.mxu0  ;;  %v1908_v39 = vpop.f32.mrf.mxu1 }
 0x2b4   : > { %v4025_v40 = vpop.f32.mrf.mxu0  ;;  %v4037_v41 = vpop.f32.mrf.mxu1 }
 0x2be   : > { %v5111_v42 = vpop.f32.mrf.mxu0  ;;  %v5113_v43 = vpop.f32.mrf.mxu1 }
 0x2c0   : > { %v4048_v44 = vpop.f32.mrf.mxu0  ;;  %v4060_v45 = vpop.f32.mrf.mxu1 }
 0x2c2   : > { %v1972_v46 = vpop.f32.mrf.mxu0  ;;  %v2036_v47 = vpop.f32.mrf.mxu1 }
 0x2c4   : > { %v4049_v48 = vpop.f32.mrf.mxu0  ;;  %v4061_v49 = vpop.f32.mrf.mxu1 }
 0x319   : > { %v2112_v51 = vpop.f32.mrf.mxu0  ;;  %v2158_v53 = vpop.f32.mrf.mxu1 }
 0x31a   : > { %v2113_v54 = vadd.f32 %v2112_v51, %v2063_v50  ;;  %v5121_v57 = vadd.f32 %v2158_v53, %v2064_v52 }
 0x31b   : > { %v4066_v55 = vpop.f32.mrf.mxu0  ;;  %v4072_v56 = vpop.f32.mrf.mxu1 }
 0x31c   : > { %v2440_v58 = vsel %vm2071_vm2, %v2113_v54, -inf  ;;  %v2443_v27 = vsel %vm2071_vm2, %v5121_v57, -inf }
 0x31d   : > { %v2161_v59 = vpop.f32.mrf.mxu1  ;;  %2441 = vmax.xlane.f32.xlu1 %v2440_v58  ;;  %v2115_v60 = vpop.f32.mrf.mxu0 }
 0x31f   : > { %v4067_v61 = vpop.f32.mrf.mxu0  ;;  %v4073_v62 = vpop.f32.mrf.mxu1 }
 0x321   : > { %2444 = vmax.xlane.f32.xlu1 %v2443_v27 }
 0x329   : > { %v2204_v1 = vpop.f32.mrf.mxu0  ;;  %v2250_v2 = vpop.f32.mrf.mxu1 }
 0x32a   : > { %v2205_v5 = vadd.f32 %v2204_v1, %v2065_v63  ;;  %v2251_v3 = vadd.f32 %v2250_v2, %v2066_v0 }
 0x32b   : > { %v4078_v4 = vpop.f32.mrf.mxu0  ;;  %v4084_v6 = vpop.f32.mrf.mxu1 }
 0x32c   : > { %v2449_v7 = vsel %vm2071_vm2, %v2251_v3, -inf  ;;  %v2446_v8 = vsel %vm2071_vm2, %v2205_v5, -inf }
 0x32d   : > { %v2253_v10 = vpop.f32.mrf.mxu1  ;;  %2450 = vmax.xlane.f32.xlu1 %v2449_v7  ;;  %2447 = vmax.xlane.f32.xlu0 %v2446_v8  ;;  %v2207_v11 = vpop.f32.mrf.mxu0 }
 0x32f   : > { %v4079_v14 = vpop.f32.mrf.mxu0  ;;  %v4085_v15 = vpop.f32.mrf.mxu1 }
 0x339   : > { %v2296_v18 = vpop.f32.mrf.mxu0  ;;  %v2342_v19 = vpop.f32.mrf.mxu1 }
 0x33a   : > { %v2297_v12 = vadd.f32 %v2296_v18, %v2067_v16  ;;  %v2343_v20 = vadd.f32 %v2342_v19, %v2068_v17 }
 0x33b   : > { %v4090_v13 = vpop.f32.mrf.mxu0  ;;  %v4096_v21 = vpop.f32.mrf.mxu1 }
 0x33c   : > { %v2455_v22 = vsel %vm2071_vm2, %v2343_v20, -inf  ;;  %v2452_v23 = vsel %vm2071_vm2, %v2297_v12, -inf }
 0x33d   : > { %v2345_v24 = vpop.f32.mrf.mxu1  ;;  %2456 = vmax.xlane.f32.xlu1 %v2455_v22  ;;  %2453 = vmax.xlane.f32.xlu0 %v2452_v23  ;;  %v2299_v28 = vpop.f32.mrf.mxu0 }
 0x33f   : > { %v4091_v29 = vpop.f32.mrf.mxu0  ;;  %v4097_v30 = vpop.f32.mrf.mxu1 }
 0x349   : > { %v2388_v33 = vpop.f32.mrf.mxu0  ;;  %v2434_v36 = vpop.f32.mrf.mxu1 }
 0x34a   : > { %v2389_v37 = vadd.f32 %v2388_v33, %v2069_v31  ;;  %v2435_v38 = vadd.f32 %v2434_v36, %v2070_v32  ;;  %v2057_v31 = vpack.c.bf16 %v5103_v25, %v5103_v25 }
 0x34b   : > { %v4102_v39 = vpop.f32.mrf.mxu0  ;;  %v4108_v40 = vpop.f32.mrf.mxu1 }
 0x34c   : > { %v2461_v41 = vsel %vm2071_vm2, %v2435_v38, -inf  ;;  %v2458_v44 = vsel %vm2071_vm2, %v2389_v37, -inf  ;;  %v2633_v39 = vsel %vm2539_vm3, %v2057_v31, 0  ;;  %v2058_v40 = vpack.c.bf16 %v5105_v26, %v5105_v26 }
 0x34d   : > { %v2437_v45 = vpop.f32.mrf.mxu1  ;;  %2462 = vmax.xlane.f32.xlu1 %v2461_v41  ;;  %2459 = vmax.xlane.f32.xlu0 %v2458_v44  ;;  %v2391_v46 = vpop.f32.mrf.mxu0 }
 0x34e   : > { %v2679_v44 = vsel %vm2539_vm3, %v2058_v40, 0  ;;  %v2060_v46 = vpack.c.bf16 %v5109_v35, %v5109_v35 }
 0x34f   : > { %v4103_v47 = vpop.f32.mrf.mxu0  ;;  %v4109_v48 = vpop.f32.mrf.mxu1 }
 0x350   : > { %v2059_v48 = vpack.c.bf16 %v5107_v34, %v5107_v34 }
 0x3a6   : > { %v2442_v49 = vpop.xlane.xlu1 %2441 }
 0x3a7   : > { %v2464_v50 = vsub.f32 %v2113_v54, %v2442_v49 }
 0x3a9   : > { %v2472_v51 = vmul.f32 1.442695, %v2464_v50 }
 0x3aa   : > { %v2445_v52 = vpop.xlane.xlu1 %2444 }
 0x3ab   : > { %4347 = vpow2.f32 %v2472_v51  ;;  %v2465_v53 = vsub.f32 %v5121_v57, %v2445_v52 }
 0x3ad   : > { %v2474_v55 = vmul.f32 1.442695, %v2465_v53 }
 0x3af   : > { %4349 = vpow2.f32 %v2474_v55  ;;  %v2771_v55 = vsel %vm2539_vm3, %v2060_v46, 0 }
 0x3b6   : > { %v2451_v56 = vpop.xlane.xlu1 %2450  ;;  %v2448_v58 = vpop.xlane.xlu0 %2447 }
 0x3b7   : > { %v2467_v59 = vsub.f32 %v2251_v3, %v2451_v56  ;;  %v2466_v60 = vsub.f32 %v2205_v5, %v2448_v58  ;;  %v2725_v56 = vsel %vm2539_vm3, %v2059_v48, 0  ;;  %v2062_v58 = vpack.c.bf16 %v5113_v43, %v5113_v43 }
 0x3b8   : > { %v4348_v61 = vpop.eup %4347 }
 0x3b9   : > { %v2478_v62 = vmul.f32 1.442695, %v2467_v59  ;;  %v2476_v27 = vmul.f32 1.442695, %v2466_v60  ;;  %v2488_v63 = vsel %vm2071_vm2, %v4348_v61, 0.0  ;;  %v2061_v60 = vpack.c.bf16 %v5111_v42, %v5111_v42 }
 0x3ba   : > { %2489 = vadd.xlane.f32.xlu0 %v2488_v63 }
 0x3bb   : > { %4351 = vpow2.f32 %v2478_v62 }
 0x3bc   : > { %v4350_v0 = vpop.eup %4349  ;;  %4353 = vpow2.f32 %v2476_v27 }
 0x3bd   : > { %v2491_v54 = vsel %vm2071_vm2, %v4350_v0, 0.0 }
 0x3be   : > { %2492 = vadd.xlane.f32.xlu1 %v2491_v54  ;;  %v2863_v54 = vsel %vm2539_vm3, %v2062_v58, 0 }
 0x3c6   : > { %v2457_v1 = vpop.xlane.xlu1 %2456  ;;  %v2454_v57 = vpop.xlane.xlu0 %2453 }
 0x3c7   : > { %v2469_v2 = vsub.f32 %v2343_v20, %v2457_v1  ;;  %v2468_v4 = vsub.f32 %v2297_v12, %v2454_v57  ;;  %v2817_v1 = vsel %vm2539_vm3, %v2061_v60, 0 }
 0x3c8   : > { %v4352_v6 = vpop.eup %4351 }
 0x3c9   : > { %v4354_v7 = vpop.eup %4353  ;;  %v2482_v3 = vmul.f32 1.442695, %v2469_v2  ;;  %v2480_v5 = vmul.f32 1.442695, %v2468_v4  ;;  %v2497_v8 = vsel %vm2071_vm2, %v4352_v6, 0.0 }
 0x3ca   : > { %2498 = vadd.xlane.f32.xlu1 %v2497_v8  ;;  %v2494_v10 = vsel %vm2071_vm2, %v4354_v7, 0.0 }
 0x3cb   : > { %4355 = vpow2.f32 %v2482_v3  ;;  %2495 = vadd.xlane.f32.xlu0 %v2494_v10  ;;  %v2915_v10 = vld [vmem:[%s5334_s4 + $0x8] sm:$0xf] }
 0x3cc   : > { %4357 = vpow2.f32 %v2480_v5  ;;  %v2914_v5 = vld [vmem:[%s5334_s4 + $0x4] sm:$0xf] }
 0x3cd   : > { %v2971_v8 = vsel %vm2539_vm3, %v2914_v5, 0 }
 0x3d6   : > { %v2463_v11 = vpop.xlane.xlu1 %2462  ;;  %v2460_v14 = vpop.xlane.xlu0 %2459 }
 0x3d7   : > { %v2471_v15 = vsub.f32 %v2435_v38, %v2463_v11  ;;  %v2470_v16 = vsub.f32 %v2389_v37, %v2460_v14 }
 0x3d8   : > { %v5155_v17 = vpop.eup %4355 }
 0x3d9   : > { %v5157_v18 = vpop.eup %4357  ;;  %v2486_v19 = vmul.f32 1.442695, %v2471_v15  ;;  %v2484_v12 = vmul.f32 1.442695, %v2470_v16  ;;  %v2503_v20 = vsel %vm2071_vm2, %v5155_v17, 0.0  ;;  %v3017_v15 = vsel %vm2539_vm3, %v2915_v10, 0 }
 0x3da   : > { %2504 = vadd.xlane.f32.xlu1 %v2503_v20  ;;  %v2500_v13 = vsel %vm2071_vm2, %v5157_v18, 0.0 }
 0x3db   : > { %4359 = vpow2.f32 %v2486_v19  ;;  %2501 = vadd.xlane.f32.xlu0 %v2500_v13 }
 0x3dc   : > { %4361 = vpow2.f32 %v2484_v12 }
 0x3e8   : > { %v5163_v21 = vpop.eup %4359 }
 0x3e9   : > { %v5165_v22 = vpop.eup %4361  ;;  %v2509_v23 = vsel %vm2071_vm2, %v5163_v21, 0.0 }
 0x3ea   : > { %2510 = vadd.xlane.f32.xlu1 %v2509_v23  ;;  %v2506_v24 = vsel %vm2071_vm2, %v5165_v22, 0.0 }
 0x3eb   : > { %2507 = vadd.xlane.f32.xlu0 %v2506_v24  ;;  %v2918_v24 = vld [vmem:[%s5334_s4 + $0x14] sm:$0xf] }
 0x443   : > { %v2490_v28 = vpop.xlane.xlu0 %2489 }
 0x444   : > { %4363 = vrcp.f32 %v2490_v28  ;;  %v2917_v28 = vld [vmem:[%s5334_s4 + $0x10] sm:$0xf] }
 0x447   : > { %v2493_v29 = vpop.xlane.xlu1 %2492 }
 0x448   : > { %4365 = vrcp.f32 %v2493_v29 }
 0x451   : > { %v4364_v30 = vpop.eup %4363 }
 0x452   : > { %v2520_v32 = vmul.f32 %v4364_v30, %v4348_v61 }
 0x453   : > { %v2499_v33 = vpop.xlane.xlu1 %2498 }
 0x454   : > { %4367 = vrcp.f32 %v2499_v33  ;;  %v2496_v36 = vpop.xlane.xlu0 %2495  ;;  %v2528_v37 = vpack.c.bf16 %v2520_v32, %v2520_v32  ;;  %v3155_v32 = vsel %vm2539_vm3, %v2918_v24, 0 }
 0x455   : > { %v4366_v38 = vpop.eup %4365  ;;  %4369 = vrcp.f32 %v2496_v36 }
 0x456   : > { %4113 = vmatmul.mubr.msk.bf16.vlgmr.msra.gmra.mxu0 %vm2071_vm2, %v2528_v37  ;;  %v2521_v41 = vmul.f32 %v4366_v38, %v4350_v0  ;;  %v3109_v37 = vsel %vm2539_vm3, %v2917_v28, 0 }
 0x457   : > { %4123 = vmatpush3.bf16.msra.mxu0 %v2633_v39  ;;  %4124 = vmatprep.mubr.msk.bf16.mxu0 %vm4442_vm1, %v4441_v9 }
 0x458   : > { %v2529_v25 = vpack.c.bf16 %v2521_v41, %v2521_v41  ;;  %4134 = vmatprep.subr.bf16.mxu0 %v4441_v9 }
 0x45a   : > { %4119 = vmatmul.mubr.msk.bf16.vlgmr.msra.gmra.mxu1 %vm2071_vm2, %v2529_v25 }
 0x45b   : > { %4129 = vmatpush3.bf16.msra.mxu1 %v2679_v44  ;;  %4130 = vmatprep.mubr.msk.bf16.mxu1 %vm4442_vm1, %v4441_v9  ;;  %v2920_v44 = vld [vmem:[%s5334_s4 + $0x1c] sm:$0xf] }
 0x45c   : > { %4140 = vmatprep.subr.bf16.mxu1 %v4441_v9  ;;  %v3247_v48 = vsel %vm2539_vm3, %v2920_v44, 0 }
 0x461   : > { %v4368_v26 = vpop.eup %4367 }
 0x462   : > { %v4370_v45 = vpop.eup %4369  ;;  %v2523_v47 = vmul.f32 %v4368_v26, %v4352_v6  ;;  %v2919_v26 = vld [vmem:[%s5334_s4 + $0x18] sm:$0xf] }
 0x463   : > { %v2505_v49 = vpop.xlane.xlu1 %2504  ;;  %v2522_v50 = vmul.f32 %v4370_v45, %v4354_v7  ;;  %v2913_v7 = vld [vmem:[%s5334_s4] sm:$0xf] }
 0x464   : > { %4371 = vrcp.f32 %v2505_v49  ;;  %v2502_v51 = vpop.xlane.xlu0 %2501  ;;  %v2531_v52 = vpack.c.bf16 %v2523_v47, %v2523_v47  ;;  %v2925_v3 = vsel %vm2539_vm3, %v2913_v7, 0 }
 0x465   : > { %4373 = vrcp.f32 %v2502_v51  ;;  %v2530_v53 = vpack.c.bf16 %v2522_v50, %v2522_v50  ;;  %v3201_v51 = vsel %vm2539_vm3, %v2919_v26, 0 }
 0x466   : > { %4131 = vmatmul.mubr.msk.bf16.vlgmr.msra.gmra.mxu1 %vm2071_vm2, %v2531_v52 }
 0x467   : > { %4125 = vmatmul.mubr.msk.bf16.vlgmr.msra.gmra.mxu0 %vm2071_vm2, %v2530_v53  ;;  %4141 = vmatpush3.bf16.msra.mxu1 %v2771_v55 }
 0x468   : > { %4135 = vmatpush3.bf16.msra.mxu0 %v2725_v56  ;;  %4136 = vmatprep.mubr.msk.bf16.mxu0 %vm4442_vm1, %v4441_v9 }
 0x469   : > { %4142 = vmatprep.mubr.msk.bf16.mxu1 %vm4442_vm1, %v4441_v9  ;;  %4146 = vmatprep.subr.bf16.mxu0 %v4441_v9 }
 0x46a   : > { %4152 = vmatprep.subr.bf16.mxu1 %v4441_v9 }
 0x471   : > { %v4372_v34 = vpop.eup %4371 }
 0x472   : > { %v4374_v35 = vpop.eup %4373  ;;  %v2525_v59 = vmul.f32 %v4372_v34, %v5155_v17  ;;  %v2916_v17 = vld [vmem:[%s5334_s4 + $0xc] sm:$0xf] }
 0x473   : > { %v2511_v61 = vpop.xlane.xlu1 %2510  ;;  %v2524_v62 = vmul.f32 %v4374_v35, %v5157_v18  ;;  %v3063_v20 = vsel %vm2539_vm3, %v2916_v17, 0 }
 0x474   : > { %4375 = vrcp.f32 %v2511_v61  ;;  %v2508_v27 = vpop.xlane.xlu0 %2507  ;;  %v2533_v63 = vpack.c.bf16 %v2525_v59, %v2525_v59 }
 0x475   : > { %4377 = vrcp.f32 %v2508_v27  ;;  %v2532_v0 = vpack.c.bf16 %v2524_v62, %v2524_v62 }
 0x476   : > { %4143 = vmatmul.mubr.msk.bf16.vlgmr.msra.gmra.mxu1 %vm2071_vm2, %v2533_v63 }
 0x477   : > { %4137 = vmatmul.mubr.msk.bf16.vlgmr.msra.gmra.mxu0 %vm2071_vm2, %v2532_v0  ;;  %4153 = vmatpush3.bf16.msra.mxu1 %v2863_v54 }
 0x478   : > { %4147 = vmatpush3.bf16.msra.mxu0 %v2817_v1  ;;  %4148 = vmatprep.mubr.msk.bf16.mxu0 %vm4442_vm1, %v4441_v9 }
 0x479   : > { %4154 = vmatprep.mubr.msk.bf16.mxu1 %vm4442_vm1, %v4441_v9  ;;  %4158 = vmatprep.subr.bf16.mxu0 %v4441_v9 }
 0x47a   : > { %4164 = vmatprep.subr.bf16.mxu1 %v4441_v9 }
 0x481   : > { %v4376_v42 = vpop.eup %4375 }
 0x482   : > { %v4378_v43 = vpop.eup %4377  ;;  %v2527_v57 = vmul.f32 %v4376_v42, %v5163_v21 }
 0x483   : > { %v2526_v2 = vmul.f32 %v4378_v43, %v5165_v22 }
 0x484   : > { %v2535_v4 = vpack.c.bf16 %v2527_v57, %v2527_v57 }
 0x485   : > { %v2534_v6 = vpack.c.bf16 %v2526_v2, %v2526_v2 }
 0x486   : > { %4155 = vmatmul.mubr.msk.bf16.vlgmr.msra.gmra.mxu1 %vm2071_vm2, %v2535_v4 }
 0x487   : > { %4149 = vmatmul.mubr.msk.bf16.vlgmr.msra.gmra.mxu0 %vm2071_vm2, %v2534_v6  ;;  %4166 = vmatprep.mubr.msk.bf16.mxu1 %vm4442_vm1, %v4441_v9 }
 0x488   : > { %4160 = vmatprep.mubr.msk.bf16.mxu0 %vm4442_vm1, %v4441_v9  ;;  %4159 = vmatpush3.bf16.msra.mxu0 %v2925_v3 }
 0x489   : > { %4170 = vmatprep.subr.bf16.mxu0 %v4441_v9  ;;  %4165 = vmatpush3.bf16.msra.mxu1 %v2971_v8 }
 0x48a   : > { %4176 = vmatprep.subr.bf16.mxu1 %v4441_v9 }
 0x516   : > { %v2577_v11 = vpop.f32.mrf.mxu0 }
 0x517   : > { %v2905_v14 = vpack.c.bf16 %v2577_v11, %v2577_v11 }
 0x518   : > { %v4114_v16 = vpop.f32.mrf.mxu0 }
 0x519   : > { %4161 = vmatmul.mubr.msk.bf16.vlgmr.msra.gmra.mxu0 %vm2071_vm2, %v2905_v14 }
 0x51a   : > { %v2580_v18 = vpop.f32.mrf.mxu0  ;;  %v2623_v19 = vpop.f32.mrf.mxu1  ;;  %4171 = vmatpush3.bf16.msra.mxu0 %v3017_v15  ;;  %4172 = vmatprep.mubr.msk.bf16.mxu0 %vm4442_vm1, %v4441_v9 }
 0x51b   : > { %v2906_v12 = vpack.c.bf16 %v2623_v19, %v2623_v19  ;;  %4182 = vmatprep.subr.bf16.mxu0 %v4441_v9 }
 0x51c   : > { %v4115_v13 = vpop.f32.mrf.mxu0  ;;  %v4120_v21 = vpop.f32.mrf.mxu1 }
 0x51d   : > { %4167 = vmatmul.mubr.msk.bf16.vlgmr.msra.gmra.mxu1 %vm2071_vm2, %v2906_v12 }
 0x51e   : > { %v2626_v22 = vpop.f32.mrf.mxu1  ;;  %4177 = vmatpush3.bf16.msra.mxu1 %v3063_v20  ;;  %4178 = vmatprep.mubr.msk.bf16.mxu1 %vm4442_vm1, %v4441_v9 }
 0x51f   : > { %4188 = vmatprep.subr.bf16.mxu1 %v4441_v9 }
 0x520   : > { %v4121_v23 = vpop.f32.mrf.mxu1 }
 0x526   : > { %v2715_v29 = vpop.f32.mrf.mxu1 }
 0x527   : > { %v2669_v30 = vpop.f32.mrf.mxu0  ;;  %v2908_v31 = vpack.c.bf16 %v2715_v29, %v2715_v29 }
 0x528   : > { %v2907_v33 = vpack.c.bf16 %v2669_v30, %v2669_v30  ;;  %v4132_v36 = vpop.f32.mrf.mxu1 }
 0x529   : > { %v4126_v38 = vpop.f32.mrf.mxu0  ;;  %4179 = vmatmul.mubr.msk.bf16.vlgmr.msra.gmra.mxu1 %vm2071_vm2, %v2908_v31 }
 0x52a   : > { %4173 = vmatmul.mubr.msk.bf16.vlgmr.msra.gmra.mxu0 %vm2071_vm2, %v2907_v33  ;;  %v2718_v39 = vpop.f32.mrf.mxu1  ;;  %4189 = vmatpush3.bf16.msra.mxu1 %v3155_v32 }
 0x52b   : > { %v2672_v40 = vpop.f32.mrf.mxu0  ;;  %4183 = vmatpush3.bf16.msra.mxu0 %v3109_v37  ;;  %4184 = vmatprep.mubr.msk.bf16.mxu0 %vm4442_vm1, %v4441_v9 }
 0x52c   : > { %v4133_v41 = vpop.f32.mrf.mxu1  ;;  %4190 = vmatprep.mubr.msk.bf16.mxu1 %vm4442_vm1, %v4441_v9  ;;  %4194 = vmatprep.subr.bf16.mxu0 %v4441_v9 }
 0x52d   : > { %v4127_v25 = vpop.f32.mrf.mxu0  ;;  %4200 = vmatprep.subr.bf16.mxu1 %v4441_v9 }
 0x536   : > { %v2807_v45 = vpop.f32.mrf.mxu1 }
 0x537   : > { %v2761_v46 = vpop.f32.mrf.mxu0  ;;  %v2910_v47 = vpack.c.bf16 %v2807_v45, %v2807_v45  ;;  %v3599_v45 = vld [vmem:[%s5335_s5] ss:$0 sm:$0xff] }
 0x538   : > { %v2909_v49 = vpack.c.bf16 %v2761_v46, %v2761_v46  ;;  %v4144_v50 = vpop.f32.mrf.mxu1 }
 0x539   : > { %v4138_v52 = vpop.f32.mrf.mxu0  ;;  %4191 = vmatmul.mubr.msk.bf16.vlgmr.msra.gmra.mxu1 %vm2071_vm2, %v2910_v47 }
 0x53a   : > { %4185 = vmatmul.mubr.msk.bf16.vlgmr.msra.gmra.mxu0 %vm2071_vm2, %v2909_v49  ;;  %v2810_v53 = vpop.f32.mrf.mxu1  ;;  %4201 = vmatpush3.bf16.msra.mxu1 %v3247_v48 }
 0x53b   : > { %v2764_v55 = vpop.f32.mrf.mxu0  ;;  %4195 = vmatpush3.bf16.msra.mxu0 %v3201_v51  ;;  %4196 = vmatprep.mubr.msk.bf16.mxu0 %vm4442_vm1, %v4441_v9 }
 0x53c   : > { %v4145_v56 = vpop.f32.mrf.mxu1  ;;  %4202 = vmatprep.mubr.msk.bf16.mxu1 %vm4442_vm1, %v4441_v9 }
 0x53d   : > { %v4139_v34 = vpop.f32.mrf.mxu0 }
 0x546   : > { %v2899_v35 = vpop.f32.mrf.mxu1 }
 0x547   : > { %v2853_v58 = vpop.f32.mrf.mxu0  ;;  %v2912_v59 = vpack.c.bf16 %v2899_v35, %v2899_v35  ;;  %v4444_v35 = vmov 1966171168  }
 0x548   : > { %v2911_v60 = vpack.c.bf16 %v2853_v58, %v2853_v58  ;;  %v4156_v61 = vpop.f32.mrf.mxu1  ;;  %v3346_v58 = vunpack.c.l.s4 %v4444_v35 }
 0x549   : > { %v4150_v62 = vpop.f32.mrf.mxu0  ;;  %4203 = vmatmul.mubr.msk.bf16.vlgmr.msra.gmra.mxu1 %vm2071_vm2, %v2912_v59  ;;  %v3348_v59 = vlaneseq }
 0x54a   : > { %4197 = vmatmul.mubr.msk.bf16.vlgmr.msra.gmra.mxu0 %vm2071_vm2, %v2911_v60  ;;  %v2902_v27 = vpop.f32.mrf.mxu1  ;;  %v3347_v62 = vunpack.c.0.s8 %v3346_v58 }
 0x54b   : > { %v2856_v63 = vpop.f32.mrf.mxu0  ;;  %v3349_v27 = vshrl.u32 %v3348_v59, 7  ;;  %vm3370_vm4 = vcmp.lt.s32.totalorder %v3348_v59, 512 }
 0x54c   : > { %v4157_v0 = vpop.f32.mrf.mxu1 }
 0x54d   : > { %v4151_v54 = vpop.f32.mrf.mxu0 }
 0x5d9   : > { %v2961_v1 = vpop.f32.mrf.mxu0 }
 0x5da   : > { %v3289_v20 = vsel %vm276_vm0, %v2961_v1, 0.0 }
 0x5db   : > { %v4162_v42 = vpop.f32.mrf.mxu0 }
 0x5dd   : > { %v2964_v43 = vpop.f32.mrf.mxu0  ;;  %v3007_v57 = vpop.f32.mrf.mxu1 }
 0x5de   : > { %v3290_v18 = vsel %vm276_vm0, %v3007_v57, 0.0  ;;  %v3350_v43 = vsub.s32 %v3347_v62, %v3349_v27 }
 0x5df   : > { %v4163_v9 = vpop.f32.mrf.mxu0  ;;  %v4168_v2 = vpop.f32.mrf.mxu1  ;;  %v3291_v22 = vadd.f32 %v3290_v18, %v3289_v20 }
 0x5e1   : > { %v3010_v4 = vpop.f32.mrf.mxu1 }
 0x5e3   : > { %v4169_v6 = vpop.f32.mrf.mxu1 }
 0x5e9   : > { %v3099_v7 = vpop.f32.mrf.mxu1 }
 0x5ea   : > { %v3053_v3 = vpop.f32.mrf.mxu0  ;;  %v3294_v30 = vsel %vm276_vm0, %v3099_v7, 0.0 }
 0x5eb   : > { %v4180_v5 = vpop.f32.mrf.mxu1  ;;  %v3292_v13 = vsel %vm276_vm0, %v3053_v3, 0.0 }
 0x5ec   : > { %v4174_v8 = vpop.f32.mrf.mxu0  ;;  %v3293_v28 = vadd.f32 %v3292_v13, %v3291_v22 }
 0x5ed   : > { %v3102_v10 = vpop.f32.mrf.mxu1 }
 0x5ee   : > { %v3056_v11 = vpop.f32.mrf.mxu0  ;;  %v3295_v32 = vadd.f32 %v3294_v30, %v3293_v28 }
 0x5ef   : > { %v4181_v14 = vpop.f32.mrf.mxu1 }
 0x5f0   : > { %v4175_v15 = vpop.f32.mrf.mxu0 }
 0x5f9   : > { %v3191_v16 = vpop.f32.mrf.mxu1 }
 0x5fa   : > { %v3145_v17 = vpop.f32.mrf.mxu0  ;;  %v3298_v36 = vsel %vm276_vm0, %v3191_v16, 0.0 }
 0x5fb   : > { %v4192_v19 = vpop.f32.mrf.mxu1  ;;  %v3296_v31 = vsel %vm276_vm0, %v3145_v17, 0.0 }
 0x5fc   : > { %v4186_v12 = vpop.f32.mrf.mxu0  ;;  %v3297_v33 = vadd.f32 %v3296_v31, %v3295_v32 }
 0x5fd   : > { %v3194_v21 = vpop.f32.mrf.mxu1 }
 0x5fe   : > { %v3148_v23 = vpop.f32.mrf.mxu0  ;;  %v3299_v38 = vadd.f32 %v3298_v36, %v3297_v33 }
 0x5ff   : > { %v4193_v24 = vpop.f32.mrf.mxu1 }
 0x600   : > { %v4187_v29 = vpop.f32.mrf.mxu0 }
 0x609   : > { %v3283_v37 = vpop.f32.mrf.mxu1 }
 0x60a   : > { %v3237_v39 = vpop.f32.mrf.mxu0  ;;  %v3302_v26 = vsel %vm276_vm0, %v3283_v37, 0.0 }
 0x60b   : > { %v3300_v40 = vsel %vm276_vm0, %v3237_v39, 0.0  ;;  %v4204_v41 = vpop.f32.mrf.mxu1 }
 0x60c   : > { %v3301_v25 = vadd.f32 %v3300_v40, %v3299_v38  ;;  %v4198_v44 = vpop.f32.mrf.mxu0 }
 0x60d   : > { %v3286_v46 = vpop.f32.mrf.mxu1 }
 0x60e   : > { %v3303_v47 = vadd.f32 %v3302_v26, %v3301_v25  ;;  %v3240_v48 = vpop.f32.mrf.mxu0 }
 0x60f   : > { %v4205_v49 = vpop.f32.mrf.mxu1 }
 0x610   : > { %v3311_v50 = vadd.f32 %v3599_v45, %v3303_v47  ;;  %v4199_v51 = vpop.f32.mrf.mxu0 }
 0x612   : > { %v3319_v52 = vrot.slane %v3311_v50, 3  ;;  %v3313_v53 = vrot.slane %v3311_v50, 1  ;;  %v3325_v55 = vrot.slane %v3311_v50, 5  ;;  %v3331_v56 = vrot.slane %v3311_v50, 7 }
 0x613   : > { %v3317_v61 = vrot.slane %v3311_v50, 2  ;;  %v3323_v1 = vrot.slane %v3311_v50, 4  ;;  %v3329_v42 = vrot.slane %v3311_v50, 6 }
 0x614   : > { %3320 = vrot.lane.b32.xlu1 %v3319_v52, %s4443_s29  ;;  %3314 = vrot.lane.b32.xlu0 %v3313_v53, %s4443_s29 }
 0x618   : > { %3326 = vrot.lane.b32.xlu1 %v3325_v55, %s4443_s29 }
 0x61c   : > { %3332 = vrot.lane.b32.xlu1 %v3331_v56, %s4443_s29 }
 0x686   : > { %v3321_v34 = vpop.permute.xlu1 %3320  ;;  %v3315_v60 = vpop.permute.xlu0 %3314 }
 0x687   : > { %v3336_v0 = vsel %vm276_vm0, %v3317_v61, %v3321_v34  ;;  %v3335_v54 = vsel %vm276_vm0, %v3311_v50, %v3315_v60 }
 0x688   : > { %v3343_v57 = vcombine.low %v3335_v54, %v3336_v0 }
 0x68a   : > { %v3327_v63 = vpop.permute.xlu1 %3326  ;;  %v3351_v7 = vrot.slane %v3343_v57, %v3350_v43 }
 0x68b   : > { %v3337_v2 = vsel %vm276_vm0, %v3323_v1, %v3327_v63 }
 0x68e   : > { %v3333_v9 = vpop.permute.xlu1 %3332 }
 0x68f   : > { %v3338_v4 = vsel %vm276_vm0, %v3329_v42, %v3333_v9 }
 0x690   : > { %v3344_v6 = vcombine.low %v3337_v2, %v3338_v4 }
 0x692   : > { %v3358_v3 = vrot.slane %v3344_v6, %v3350_v43 }
 0x694   : > { %v3359_v5 = vcombine.low %v3351_v7, %v3358_v3 }
 0x696   : > { %v3366_v8 = vrot.slane %v3359_v5, %v3350_v43 }
 0x698   : > { %3372 = vst.msk [vmem:[%s269_s14] sm:$0xf] %vm3370_vm4, %v3366_v8 }
 0x699   : > { %4392 = shalt.err (!%p4389_p3)
}
 0x69a   : > { %s4393_s23 = scalar_lea.hbm %s3386_s18, 64  ;;  %s4397_s9 = scalar_lea.hbm %s5337_s7, 128 }
 0x69b   : > { %p4394_p4 = scmp.ne.s32.totalorder %s3386_s18, %s4393_s23  ;;  %p4398_p9 = scmp.lt.s32.totalorder %s3386_s18, %s5337_s7 }
 0x69c   : > { %p4399_p10 = scmp.lt.s32.totalorder %s4397_s9, %s4393_s23 }
 0x69d   : > { %p4395_p7 = pnand %p4394_p4, %p4524_p5 }
 0x69e   : > { %p4400_p11 = por %p4399_p10, %p4398_p9 }
 0x69f   : > { %p4396_p8 = pneg %p4395_p7 }
 0x6a1   : > { %p4401_p12 = pnand %p4400_p11, %p4396_p8 }
 0x6a3   : > { %4404 = shalt.err (!%p4401_p12)
}
 0x6a4   : > { %4206 = dma.vmem_to_hbm [thread:$0]  (%p4524_p5), %s3389_s15, 64, %s3386_s18, %s3374_s19  }
 0x6a5 PF: > { %p4212_p13 = scmp.ge.s32.totalorder %s4439_s27, 2  ;;  %s3400_s16 = sand.u32 1, %s4427_s24  }
 0x6a6   : > { %s3401_s17 = scalar_lea.sflag [#allocation3], %s3400_s16 }
 0x6a7   : > { %p4209_p0 = pnand %p4212_p13, %p4528_p6 }
 0x6a9   : > { %p4210_p1 = pneg %p4209_p0 }
 0x6ab   : > { %4422 = dma.done.wait (%p4210_p1), %s3401_s17, 64  }
 0x6ac   : > { %4424 = vsyncadd (%p4210_p1), %s3401_s17, 4294967232  ;;  %p17_p2 = scmp.ge.s32.totalorder %s4511_s30, 4   ;;  %s5340_s24 = smov %s4431_s25 }
 0x6ad   : > { %s5341_s25 = smov %s4435_s26  ;;  %s5342_s26 = smov %s4522_s10 }
 0x6ae   : > { %s5343_s27 = smov %s4511_s30  ;;  %19 = sbr.rel (!%p17_p2) target bundleno = 3 (0x3), region = 83 }
 0x6b3   :  { %3406 = vsyncpa [#allocation3], 1 }
 0x6b4   :  { %3408 = vsyncpa [#allocation3 + $0x1], 1 }

</bundles_post_ra>
